<compile_context>
chip_gen: v5e
topology: v5e:2x2
jax: 0.10.0
libtpu: 0.0.40
codegen_flags: <defaults>
</compile_context>

<pallas_src>
import jax
import jax.numpy as jnp
from jax.experimental import pallas as pl
from jax.experimental.pallas import tpu as pltpu


def lstm_kernel(x_ref,          # (T*Bp, I)   time-major, flattened
                wih0_il_ref,    # (I, 8H)     interleaved, layer-1 cols zero
                b_il_ref,       # (1, 8H)     interleaved b0 / b1
                wfused_ref,     # (2H, 8H)    fused recurrent weights
                wfc_ref,        # (1, 2H)     fc row, zero-padded over layer-0 cols
                bfc_ref,        # (1, 1)
                out_ref,        # (Bp, 1)
                slab_ref):      # scratch (T*Bp, 8H): per-step gate bias slab
    Bp = out_ref.shape[0]
    G2 = slab_ref.shape[1]          # 8H: combined gates of both layers
    H = G2 // 8
    H2 = 2 * H
    I = x_ref.shape[1]
    T = x_ref.shape[0] // Bp

    # ---- off-recurrence: per-timestep gate-bias slab for BOTH layers ----
    # layer-0 columns: x_t @ W_ih0 + b0 (K=1 -> VPU broadcast-multiply);
    # layer-1 columns: b1 (wih0_il is zero there).  Sigmoid-gate columns are
    # already pre-scaled by 0.5 in the wrapper.
    x2d = x_ref[...]
    if I == 1:
        slab = x2d * wih0_il_ref[...] + b_il_ref[...]
    else:
        slab = (jnp.dot(x2d, wih0_il_ref[...],
                        preferred_element_type=jnp.float32) + b_il_ref[...])
    slab_ref[...] = slab

    def combined_cell(gates, c):
        # sigmoid(x) = 0.5*tanh(x/2) + 0.5; the /2 lives in the weights, so a
        # single full-width tanh covers both layers' i,f,g,o gates.  All gate
        # slices are 2H = 128 lanes wide -> vreg-aligned, no relayout.
        t = jnp.tanh(gates)
        i_g = 0.5 * t[:, 0 * H2:1 * H2] + 0.5
        f_g = 0.5 * t[:, 1 * H2:2 * H2] + 0.5
        g_g = t[:, 2 * H2:3 * H2]
        o_g = 0.5 * t[:, 3 * H2:4 * H2] + 0.5
        c_new = f_g * c + i_g * g_g
        h_new = o_g * jnp.tanh(c_new)
        return h_new, c_new

    # column mask selecting layer-0 state lanes of the combined [h0|h1] state
    lane = jax.lax.broadcasted_iota(jnp.int32, (Bp, H2), dimension=1)
    layer0_mask = (lane < H).astype(jnp.float32)

    z = jnp.zeros((Bp, H2), jnp.float32)

    # ---- prologue (wavefront fill): layer 0 consumes timestep 0; h0_{-1}=0
    # so no matmul is needed.  Layer-1 lanes produce garbage -> masked off.
    h, c = combined_cell(slab_ref[pl.ds(0, Bp), :], z)
    h = h * layer0_mask
    c = c * layer0_mask

    # ---- wavefront recurrence: one fused (Bp,2H)@(2H,8H) MXU push per step.
    # Iteration s: layer 0 processes timestep s, layer 1 processes timestep
    # s-1; both read only the previous iteration's h = [h0_{s-1} | h1_{s-2}].
    def step(s, carry):
        h, c = carry
        base = pl.multiple_of(s * Bp, Bp)
        fused = jnp.dot(h, wfused_ref[...], preferred_element_type=jnp.float32)
        gates = fused + slab_ref[pl.ds(base, Bp), :]
        return combined_cell(gates, c)

    h, c = jax.lax.fori_loop(1, T, step, (h, c),
                             unroll=(True if T <= 16 else 4))

    # ---- epilogue (wavefront drain): layer 1 consumes timestep T-1.
    # Layer-0 half of the result is unused.
    fused = jnp.dot(h, wfused_ref[...], preferred_element_type=jnp.float32)
    h, _ = combined_cell(fused + b_il_ref[...], c)

    # ---- fc on the final layer-1 hidden state: VPU mul + lane reduction.
    # wfc is zero over layer-0 columns, so no lane slice of h is needed.
    out_ref[...] = (jnp.sum(h * wfc_ref[...], axis=-1, keepdims=True)
                    + bfc_ref[...])


def lstm_forward_pallas(x, params):
    """x: (B, T, I) float32 (batch_first, like PyTorch).  Returns (B, 1)."""
    B, T, I = x.shape
    H = params["whh0_t"].shape[0]
    G = 4 * H
    G2 = 8 * H
    Bp = max(8, ((B + 7) // 8) * 8)       # pad batch to f32 sublane granularity

    x_tm = jnp.transpose(x, (1, 0, 2))    # time-major (T, B, I)
    if Bp != B:
        x_tm = jnp.pad(x_tm, ((0, 0), (0, Bp - B), (0, 0)))
    x_flat = x_tm.reshape(T * Bp, I)      # (T*Bp, I)

    # ---- one-time weight packing (outside the kernel) ----
    def interleave(a, b):
        # a, b: (R, 4H) gate-blocked [i,f,g,o] -> (R, 8H) interleaved
        # [i_a, i_b, f_a, f_b, g_a, g_b, o_a, o_b]
        R = a.shape[0]
        return jnp.concatenate(
            [a.reshape(R, 4, H), b.reshape(R, 4, H)], axis=2).reshape(R, G2)

    # 0.5 pre-scale on sigmoid-gate (i, f, o) columns; exact in f32.
    gate_scale = jnp.concatenate(
        [jnp.full((1, H), 0.5, jnp.float32),
         jnp.full((1, H), 0.5, jnp.float32),
         jnp.ones((1, H), jnp.float32),
         jnp.full((1, H), 0.5, jnp.float32)], axis=1)          # (1, 4H)

    whh0 = params["whh0_t"] * gate_scale
    wih1 = params["wih1_t"] * gate_scale
    whh1 = params["whh1_t"] * gate_scale
    wih0 = params["wih0_t"] * gate_scale
    b0 = params["b0"] * gate_scale
    b1 = params["b1"] * gate_scale

    # Fused recurrent weights: rows 0:H multiply h0, rows H:2H multiply h1.
    w_fused = jnp.concatenate(
        [interleave(whh0, wih1),
         interleave(jnp.zeros_like(whh1), whh1)], axis=0)       # (2H, 8H)
    wih0_il = interleave(wih0, jnp.zeros((I, G), jnp.float32))  # (I, 8H)
    b_il = interleave(b0, b1)                                   # (1, 8H)

    # fc row padded with zeros over the layer-0 half of the combined state.
    wfc_pad = jnp.concatenate(
        [jnp.zeros((1, H), jnp.float32),
         params["wfc_t"].reshape(1, H)], axis=1)                # (1, 2H)

    def full_spec(shape):
        return pl.BlockSpec(shape, lambda i: tuple(0 for _ in shape))

    out = pl.pallas_call(
        lstm_kernel,
        out_shape=jax.ShapeDtypeStruct((Bp, 1), jnp.float32),
        grid_spec=pltpu.PrefetchScalarGridSpec(
            num_scalar_prefetch=0,
            grid=(1,),                    # single invocation; time loop in-kernel
            in_specs=[
                full_spec((T * Bp, I)),
                full_spec((I, G2)),
                full_spec((1, G2)),
                full_spec((2 * H, G2)),
                full_spec((1, 2 * H)),
                full_spec((1, 1)),
            ],
            out_specs=pl.BlockSpec((Bp, 1), lambda i: (0, 0)),
            scratch_shapes=[
                pltpu.VMEM((T * Bp, G2), jnp.float32),   # per-step gate-bias slab
            ],
        ),
        compiler_params=pltpu.CompilerParams(
            dimension_semantics=("arbitrary",)),
    )(x_flat, wih0_il, b_il, w_fused, wfc_pad, params["bfc"])
    return out[:B]


def _lstm_cell_ref(x, h, c, w_ih_t, w_hh_t, b, H):
    gates = (jnp.dot(x, w_ih_t, preferred_element_type=jnp.float32)
             + jnp.dot(h, w_hh_t, preferred_element_type=jnp.float32)
             + b)
    i = jax.nn.sigmoid(gates[:, 0 * H:1 * H])
    f = jax.nn.sigmoid(gates[:, 1 * H:2 * H])
    g = jnp.tanh(gates[:, 2 * H:3 * H])
    o = jax.nn.sigmoid(gates[:, 3 * H:4 * H])
    c_new = f * c + i * g
    h_new = o * jnp.tanh(c_new)
    return h_new, c_new


def lstm_forward_ref(x, params):
    """Pure-JAX reference (same math, lax.scan over time)."""
    B, T, I = x.shape
    H = params["whh0_t"].shape[0]
    h0 = jnp.zeros((B, H), jnp.float32)
    c0 = jnp.zeros((B, H), jnp.float32)
    h1 = jnp.zeros((B, H), jnp.float32)
    c1 = jnp.zeros((B, H), jnp.float32)

    def step(carry, x_t):
        h0, c0, h1, c1 = carry
        h0, c0 = _lstm_cell_ref(x_t, h0, c0, params["wih0_t"],
                                params["whh0_t"], params["b0"], H)
        h1, c1 = _lstm_cell_ref(h0, h1, c1, params["wih1_t"],
                                params["whh1_t"], params["b1"], H)
        return (h0, c0, h1, c1), None

    x_tm = jnp.transpose(x, (1, 0, 2))
    (h0, c0, h1, c1), _ = jax.lax.scan(step, (h0, c0, h1, c1), x_tm)
    return jnp.dot(h1, params["wfc_t"]) + params["bfc"]


def init_params(key, input_size=1, hidden_size=64):
    H = hidden_size
    k = 1.0 / jnp.sqrt(H)
    keys = jax.random.split(key, 10)

    def u(k_, shape):
        return jax.random.uniform(k_, shape, jnp.float32, minval=-k, maxval=k)

    # PyTorch stores W_ih: (4H, in), W_hh: (4H, H); we store transposed.
    wih0 = u(keys[0], (4 * H, input_size))
    whh0 = u(keys[1], (4 * H, H))
    b_ih0 = u(keys[2], (4 * H,))
    b_hh0 = u(keys[3], (4 * H,))
    wih1 = u(keys[4], (4 * H, H))
    whh1 = u(keys[5], (4 * H, H))
    b_ih1 = u(keys[6], (4 * H,))
    b_hh1 = u(keys[7], (4 * H,))
    wfc = u(keys[8], (1, H))
    bfc = u(keys[9], (1,))

    return {
        "wih0_t": wih0.T,                      # (I, 4H)
        "whh0_t": whh0.T,                      # (H, 4H)
        "b0": (b_ih0 + b_hh0).reshape(1, 4 * H),
        "wih1_t": wih1.T,                      # (H, 4H)
        "whh1_t": whh1.T,                      # (H, 4H)
        "b1": (b_ih1 + b_hh1).reshape(1, 4 * H),
        "wfc_t": wfc.T,                        # (H, 1)
        "bfc": bfc.reshape(1, 1),
    }


if __name__ == "__main__":
    key = jax.random.PRNGKey(0)
    kx, kp = jax.random.split(key)

    B, T, I, H = 2, 8, 1, 64
    x = jax.random.normal(kx, (B, T, I), jnp.float32)
    params = init_params(kp, input_size=I, hidden_size=H)

    out = lstm_forward_pallas(x, params)
    out = jax.block_until_ready(out)

    ref = lstm_forward_ref(x, params)
    assert out.shape == (B, 1)
    # sigmoid-via-tanh rewrite shifts numerics at the ~1e-6 level vs the
    # jax.nn.sigmoid reference; allow a slightly looser tolerance.
    assert jnp.allclose(out, ref, atol=1e-4, rtol=1e-4), (out, ref)

    print("KERNEL_OK")
</pallas_src>

<mosaic_0001>
module attributes {stable_mosaic.version = 11 : i64} {
  func.func @lstm_kernel(%arg0: i32, %arg1: memref<64x1xf32, #tpu.memory_space<vmem>>, %arg2: memref<1x512xf32, #tpu.memory_space<vmem>>, %arg3: memref<1x512xf32, #tpu.memory_space<vmem>>, %arg4: memref<128x512xf32, #tpu.memory_space<vmem>>, %arg5: memref<1x128xf32, #tpu.memory_space<vmem>>, %arg6: memref<1x1xf32, #tpu.memory_space<vmem>>, %arg7: memref<8x1xf32, #tpu.memory_space<vmem>>, %arg8: memref<64x512xf32, #tpu.memory_space<vmem>>) attributes {dimension_semantics = [#tpu.dimension_semantics<arbitrary>], iteration_bounds = array<i64: 1>, scalar_prefetch = 0 : i64, scratch_operands = 1 : i64, tpu.core_type = #tpu.core_type<tc>, window_params = [{pipeline_mode = #tpu.pipeline_mode<synchronous>, transform_indices = @transform_0, window_bounds = array<i64: 64, 1>}, {pipeline_mode = #tpu.pipeline_mode<synchronous>, transform_indices = @transform_1, window_bounds = array<i64: 1, 512>}, {pipeline_mode = #tpu.pipeline_mode<synchronous>, transform_indices = @transform_2, window_bounds = array<i64: 1, 512>}, {pipeline_mode = #tpu.pipeline_mode<synchronous>, transform_indices = @transform_3, window_bounds = array<i64: 128, 512>}, {pipeline_mode = #tpu.pipeline_mode<synchronous>, transform_indices = @transform_4, window_bounds = array<i64: 1, 128>}, {pipeline_mode = #tpu.pipeline_mode<synchronous>, transform_indices = @transform_5, window_bounds = array<i64: 1, 1>}, {pipeline_mode = #tpu.pipeline_mode<synchronous>, transform_indices = @transform_6, window_bounds = array<i64: 8, 1>}]} {
    %c0 = arith.constant 0 : index
    %c0_0 = arith.constant 0 : index
    %0 = vector.load %arg1[%c0, %c0_0] : memref<64x1xf32, #tpu.memory_space<vmem>>, vector<64x1xf32>
    %c0_1 = arith.constant 0 : index
    %c0_2 = arith.constant 0 : index
    %1 = vector.load %arg2[%c0_1, %c0_2] : memref<1x512xf32, #tpu.memory_space<vmem>>, vector<1x512xf32>
    %2 = vector.broadcast %0 : vector<64x1xf32> to vector<64x512xf32>
    %3 = vector.broadcast %1 : vector<1x512xf32> to vector<64x512xf32>
    %4 = arith.mulf %2, %3 : vector<64x512xf32>
    %c0_3 = arith.constant 0 : index
    %c0_4 = arith.constant 0 : index
    %5 = vector.load %arg3[%c0_3, %c0_4] : memref<1x512xf32, #tpu.memory_space<vmem>>, vector<1x512xf32>
    %6 = vector.broadcast %5 : vector<1x512xf32> to vector<64x512xf32>
    %7 = arith.addf %4, %6 : vector<64x512xf32>
    %c0_5 = arith.constant 0 : index
    %c0_6 = arith.constant 0 : index
    %8 = vector.load %arg8[%c0_5, %c0_6] : memref<64x512xf32, #tpu.memory_space<vmem>>, vector<64x512xf32>
    tpu.vector_store %arg8[%c0_5, %c0_6], %7 {strides = array<i32>} : memref<64x512xf32, #tpu.memory_space<vmem>>, vector<64x512xf32>,
    %9 = tpu.iota {dimensions = array<i32: 1>} : vector<8x128xi32>
    %c64_i32 = arith.constant 64 : i32
    %10 = vector.broadcast %c64_i32 : i32 to vector<8x128xi32>
    %11 = arith.cmpi slt, %9, %10 : vector<8x128xi32>
    %12 = arith.extui %11 : vector<8x128xi1> to vector<8x128xi32>
    %13 = arith.sitofp %12 : vector<8x128xi32> to vector<8x128xf32>
    %cst = arith.constant 0.000000e+00 : f32
    %14 = vector.broadcast %cst : f32 to vector<8x128xf32>
    %c0_7 = arith.constant 0 : index
    %c0_8 = arith.constant 0 : index
    %15 = vector.load %arg8[%c0_7, %c0_8] : memref<64x512xf32, #tpu.memory_space<vmem>>, vector<8x512xf32>
    %16 = math.tanh %15 : vector<8x512xf32>
    %17 = vector.extract_strided_slice %16 {offsets = [0, 0], sizes = [8, 128], strides = [1, 1]} : vector<8x512xf32> to vector<8x128xf32>
    %cst_9 = arith.constant 5.000000e-01 : f32
    %18 = vector.broadcast %cst_9 : f32 to vector<8x128xf32>
    %19 = arith.mulf %18, %17 : vector<8x128xf32>
    %cst_10 = arith.constant 5.000000e-01 : f32
    %20 = vector.broadcast %cst_10 : f32 to vector<8x128xf32>
    %21 = arith.addf %19, %20 : vector<8x128xf32>
    %22 = vector.extract_strided_slice %16 {offsets = [0, 128], sizes = [8, 128], strides = [1, 1]} : vector<8x512xf32> to vector<8x128xf32>
    %cst_11 = arith.constant 5.000000e-01 : f32
    %23 = vector.broadcast %cst_11 : f32 to vector<8x128xf32>
    %24 = arith.mulf %23, %22 : vector<8x128xf32>
    %cst_12 = arith.constant 5.000000e-01 : f32
    %25 = vector.broadcast %cst_12 : f32 to vector<8x128xf32>
    %26 = arith.addf %24, %25 : vector<8x128xf32>
    %27 = vector.extract_strided_slice %16 {offsets = [0, 256], sizes = [8, 128], strides = [1, 1]} : vector<8x512xf32> to vector<8x128xf32>
    %28 = vector.extract_strided_slice %16 {offsets = [0, 384], sizes = [8, 128], strides = [1, 1]} : vector<8x512xf32> to vector<8x128xf32>
    %cst_13 = arith.constant 5.000000e-01 : f32
    %29 = vector.broadcast %cst_13 : f32 to vector<8x128xf32>
    %30 = arith.mulf %29, %28 : vector<8x128xf32>
    %cst_14 = arith.constant 5.000000e-01 : f32
    %31 = vector.broadcast %cst_14 : f32 to vector<8x128xf32>
    %32 = arith.addf %30, %31 : vector<8x128xf32>
    %33 = arith.mulf %26, %14 : vector<8x128xf32>
    %34 = arith.mulf %21, %27 : vector<8x128xf32>
    %35 = arith.addf %33, %34 : vector<8x128xf32>
    %36 = math.tanh %35 : vector<8x128xf32>
    %37 = arith.mulf %32, %36 : vector<8x128xf32>
    %38 = arith.mulf %37, %13 : vector<8x128xf32>
    %39 = arith.mulf %35, %13 : vector<8x128xf32>
    %c1_i32 = arith.constant 1 : i32
    %c8_i32 = arith.constant 8 : i32
    %40 = arith.muli %c1_i32, %c8_i32 : i32
    %41 = tpu.assume_multiple %40, 8 : i32
    %c0_15 = arith.constant 0 : index
    %c0_16 = arith.constant 0 : index
    %42 = vector.load %arg4[%c0_15, %c0_16] : memref<128x512xf32, #tpu.memory_space<vmem>>, vector<128x512xf32>
    %cst_17 = arith.constant dense<0.000000e+00> : vector<8x512xf32>
    %43 = tpu.matmul %38, %42, %cst_17 {dimension_numbers = #tpu.dot_dimension_numbers<[1], [0], [0], [1], [0, 0, 1, 1], [], []>} : vector<8x128xf32>, vector<128x512xf32>, vector<8x512xf32> -> vector<8x512xf32>
    %44 = arith.index_cast %41 : i32 to index
    %c0_18 = arith.constant 0 : index
    %45 = vector.load %arg8[%44, %c0_18] : memref<64x512xf32, #tpu.memory_space<vmem>>, vector<8x512xf32>
    %46 = arith.addf %43, %45 : vector<8x512xf32>
    %47 = math.tanh %46 : vector<8x512xf32>
    %48 = vector.extract_strided_slice %47 {offsets = [0, 0], sizes = [8, 128], strides = [1, 1]} : vector<8x512xf32> to vector<8x128xf32>
    %cst_19 = arith.constant 5.000000e-01 : f32
    %49 = vector.broadcast %cst_19 : f32 to vector<8x128xf32>
    %50 = arith.mulf %49, %48 : vector<8x128xf32>
    %cst_20 = arith.constant 5.000000e-01 : f32
    %51 = vector.broadcast %cst_20 : f32 to vector<8x128xf32>
    %52 = arith.addf %50, %51 : vector<8x128xf32>
    %53 = vector.extract_strided_slice %47 {offsets = [0, 128], sizes = [8, 128], strides = [1, 1]} : vector<8x512xf32> to vector<8x128xf32>
    %cst_21 = arith.constant 5.000000e-01 : f32
    %54 = vector.broadcast %cst_21 : f32 to vector<8x128xf32>
    %55 = arith.mulf %54, %53 : vector<8x128xf32>
    %cst_22 = arith.constant 5.000000e-01 : f32
    %56 = vector.broadcast %cst_22 : f32 to vector<8x128xf32>
    %57 = arith.addf %55, %56 : vector<8x128xf32>
    %58 = vector.extract_strided_slice %47 {offsets = [0, 256], sizes = [8, 128], strides = [1, 1]} : vector<8x512xf32> to vector<8x128xf32>
    %59 = vector.extract_strided_slice %47 {offsets = [0, 384], sizes = [8, 128], strides = [1, 1]} : vector<8x512xf32> to vector<8x128xf32>
    %cst_23 = arith.constant 5.000000e-01 : f32
    %60 = vector.broadcast %cst_23 : f32 to vector<8x128xf32>
    %61 = arith.mulf %60, %59 : vector<8x128xf32>
    %cst_24 = arith.constant 5.000000e-01 : f32
    %62 = vector.broadcast %cst_24 : f32 to vector<8x128xf32>
    %63 = arith.addf %61, %62 : vector<8x128xf32>
    %64 = arith.mulf %57, %39 : vector<8x128xf32>
    %65 = arith.mulf %52, %58 : vector<8x128xf32>
    %66 = arith.addf %64, %65 : vector<8x128xf32>
    %67 = math.tanh %66 : vector<8x128xf32>
    %68 = arith.mulf %63, %67 : vector<8x128xf32>
    %c2_i32 = arith.constant 2 : i32
    %c8_i32_25 = arith.constant 8 : i32
    %69 = arith.muli %c2_i32, %c8_i32_25 : i32
    %70 = tpu.assume_multiple %69, 8 : i32
    %c0_26 = arith.constant 0 : index
    %c0_27 = arith.constant 0 : index
    %71 = vector.load %arg4[%c0_26, %c0_27] : memref<128x512xf32, #tpu.memory_space<vmem>>, vector<128x512xf32>
    %cst_28 = arith.constant dense<0.000000e+00> : vector<8x512xf32>
    %72 = tpu.matmul %68, %71, %cst_28 {dimension_numbers = #tpu.dot_dimension_numbers<[1], [0], [0], [1], [0, 0, 1, 1], [], []>} : vector<8x128xf32>, vector<128x512xf32>, vector<8x512xf32> -> vector<8x512xf32>
    %73 = arith.index_cast %70 : i32 to index
    %c0_29 = arith.constant 0 : index
    %74 = vector.load %arg8[%73, %c0_29] : memref<64x512xf32, #tpu.memory_space<vmem>>, vector<8x512xf32>
    %75 = arith.addf %72, %74 : vector<8x512xf32>
    %76 = math.tanh %75 : vector<8x512xf32>
    %77 = vector.extract_strided_slice %76 {offsets = [0, 0], sizes = [8, 128], strides = [1, 1]} : vector<8x512xf32> to vector<8x128xf32>
    %cst_30 = arith.constant 5.000000e-01 : f32
    %78 = vector.broadcast %cst_30 : f32 to vector<8x128xf32>
    %79 = arith.mulf %78, %77 : vector<8x128xf32>
    %cst_31 = arith.constant 5.000000e-01 : f32
    %80 = vector.broadcast %cst_31 : f32 to vector<8x128xf32>
    %81 = arith.addf %79, %80 : vector<8x128xf32>
    %82 = vector.extract_strided_slice %76 {offsets = [0, 128], sizes = [8, 128], strides = [1, 1]} : vector<8x512xf32> to vector<8x128xf32>
    %cst_32 = arith.constant 5.000000e-01 : f32
    %83 = vector.broadcast %cst_32 : f32 to vector<8x128xf32>
    %84 = arith.mulf %83, %82 : vector<8x128xf32>
    %cst_33 = arith.constant 5.000000e-01 : f32
    %85 = vector.broadcast %cst_33 : f32 to vector<8x128xf32>
    %86 = arith.addf %84, %85 : vector<8x128xf32>
    %87 = vector.extract_strided_slice %76 {offsets = [0, 256], sizes = [8, 128], strides = [1, 1]} : vector<8x512xf32> to vector<8x128xf32>
    %88 = vector.extract_strided_slice %76 {offsets = [0, 384], sizes = [8, 128], strides = [1, 1]} : vector<8x512xf32> to vector<8x128xf32>
    %cst_34 = arith.constant 5.000000e-01 : f32
    %89 = vector.broadcast %cst_34 : f32 to vector<8x128xf32>
    %90 = arith.mulf %89, %88 : vector<8x128xf32>
    %cst_35 = arith.constant 5.000000e-01 : f32
    %91 = vector.broadcast %cst_35 : f32 to vector<8x128xf32>
    %92 = arith.addf %90, %91 : vector<8x128xf32>
    %93 = arith.mulf %86, %66 : vector<8x128xf32>
    %94 = arith.mulf %81, %87 : vector<8x128xf32>
    %95 = arith.addf %93, %94 : vector<8x128xf32>
    %96 = math.tanh %95 : vector<8x128xf32>
    %97 = arith.mulf %92, %96 : vector<8x128xf32>
    %c3_i32 = arith.constant 3 : i32
    %c8_i32_36 = arith.constant 8 : i32
    %98 = arith.muli %c3_i32, %c8_i32_36 : i32
    %99 = tpu.assume_multiple %98, 8 : i32
    %c0_37 = arith.constant 0 : index
    %c0_38 = arith.constant 0 : index
    %100 = vector.load %arg4[%c0_37, %c0_38] : memref<128x512xf32, #tpu.memory_space<vmem>>, vector<128x512xf32>
    %cst_39 = arith.constant dense<0.000000e+00> : vector<8x512xf32>
    %101 = tpu.matmul %97, %100, %cst_39 {dimension_numbers = #tpu.dot_dimension_numbers<[1], [0], [0], [1], [0, 0, 1, 1], [], []>} : vector<8x128xf32>, vector<128x512xf32>, vector<8x512xf32> -> vector<8x512xf32>
    %102 = arith.index_cast %99 : i32 to index
    %c0_40 = arith.constant 0 : index
    %103 = vector.load %arg8[%102, %c0_40] : memref<64x512xf32, #tpu.memory_space<vmem>>, vector<8x512xf32>
    %104 = arith.addf %101, %103 : vector<8x512xf32>
    %105 = math.tanh %104 : vector<8x512xf32>
    %106 = vector.extract_strided_slice %105 {offsets = [0, 0], sizes = [8, 128], strides = [1, 1]} : vector<8x512xf32> to vector<8x128xf32>
    %cst_41 = arith.constant 5.000000e-01 : f32
    %107 = vector.broadcast %cst_41 : f32 to vector<8x128xf32>
    %108 = arith.mulf %107, %106 : vector<8x128xf32>
    %cst_42 = arith.constant 5.000000e-01 : f32
    %109 = vector.broadcast %cst_42 : f32 to vector<8x128xf32>
    %110 = arith.addf %108, %109 : vector<8x128xf32>
    %111 = vector.extract_strided_slice %105 {offsets = [0, 128], sizes = [8, 128], strides = [1, 1]} : vector<8x512xf32> to vector<8x128xf32>
    %cst_43 = arith.constant 5.000000e-01 : f32
    %112 = vector.broadcast %cst_43 : f32 to vector<8x128xf32>
    %113 = arith.mulf %112, %111 : vector<8x128xf32>
    %cst_44 = arith.constant 5.000000e-01 : f32
    %114 = vector.broadcast %cst_44 : f32 to vector<8x128xf32>
    %115 = arith.addf %113, %114 : vector<8x128xf32>
    %116 = vector.extract_strided_slice %105 {offsets = [0, 256], sizes = [8, 128], strides = [1, 1]} : vector<8x512xf32> to vector<8x128xf32>
    %117 = vector.extract_strided_slice %105 {offsets = [0, 384], sizes = [8, 128], strides = [1, 1]} : vector<8x512xf32> to vector<8x128xf32>
    %cst_45 = arith.constant 5.000000e-01 : f32
    %118 = vector.broadcast %cst_45 : f32 to vector<8x128xf32>
    %119 = arith.mulf %118, %117 : vector<8x128xf32>
    %cst_46 = arith.constant 5.000000e-01 : f32
    %120 = vector.broadcast %cst_46 : f32 to vector<8x128xf32>
    %121 = arith.addf %119, %120 : vector<8x128xf32>
    %122 = arith.mulf %115, %95 : vector<8x128xf32>
    %123 = arith.mulf %110, %116 : vector<8x128xf32>
    %124 = arith.addf %122, %123 : vector<8x128xf32>
    %125 = math.tanh %124 : vector<8x128xf32>
    %126 = arith.mulf %121, %125 : vector<8x128xf32>
    %c4_i32 = arith.constant 4 : i32
    %c8_i32_47 = arith.constant 8 : i32
    %127 = arith.muli %c4_i32, %c8_i32_47 : i32
    %128 = tpu.assume_multiple %127, 8 : i32
    %c0_48 = arith.constant 0 : index
    %c0_49 = arith.constant 0 : index
    %129 = vector.load %arg4[%c0_48, %c0_49] : memref<128x512xf32, #tpu.memory_space<vmem>>, vector<128x512xf32>
    %cst_50 = arith.constant dense<0.000000e+00> : vector<8x512xf32>
    %130 = tpu.matmul %126, %129, %cst_50 {dimension_numbers = #tpu.dot_dimension_numbers<[1], [0], [0], [1], [0, 0, 1, 1], [], []>} : vector<8x128xf32>, vector<128x512xf32>, vector<8x512xf32> -> vector<8x512xf32>
    %131 = arith.index_cast %128 : i32 to index
    %c0_51 = arith.constant 0 : index
    %132 = vector.load %arg8[%131, %c0_51] : memref<64x512xf32, #tpu.memory_space<vmem>>, vector<8x512xf32>
    %133 = arith.addf %130, %132 : vector<8x512xf32>
    %134 = math.tanh %133 : vector<8x512xf32>
    %135 = vector.extract_strided_slice %134 {offsets = [0, 0], sizes = [8, 128], strides = [1, 1]} : vector<8x512xf32> to vector<8x128xf32>
    %cst_52 = arith.constant 5.000000e-01 : f32
    %136 = vector.broadcast %cst_52 : f32 to vector<8x128xf32>
    %137 = arith.mulf %136, %135 : vector<8x128xf32>
    %cst_53 = arith.constant 5.000000e-01 : f32
    %138 = vector.broadcast %cst_53 : f32 to vector<8x128xf32>
    %139 = arith.addf %137, %138 : vector<8x128xf32>
    %140 = vector.extract_strided_slice %134 {offsets = [0, 128], sizes = [8, 128], strides = [1, 1]} : vector<8x512xf32> to vector<8x128xf32>
    %cst_54 = arith.constant 5.000000e-01 : f32
    %141 = vector.broadcast %cst_54 : f32 to vector<8x128xf32>
    %142 = arith.mulf %141, %140 : vector<8x128xf32>
    %cst_55 = arith.constant 5.000000e-01 : f32
    %143 = vector.broadcast %cst_55 : f32 to vector<8x128xf32>
    %144 = arith.addf %142, %143 : vector<8x128xf32>
    %145 = vector.extract_strided_slice %134 {offsets = [0, 256], sizes = [8, 128], strides = [1, 1]} : vector<8x512xf32> to vector<8x128xf32>
    %146 = vector.extract_strided_slice %134 {offsets = [0, 384], sizes = [8, 128], strides = [1, 1]} : vector<8x512xf32> to vector<8x128xf32>
    %cst_56 = arith.constant 5.000000e-01 : f32
    %147 = vector.broadcast %cst_56 : f32 to vector<8x128xf32>
    %148 = arith.mulf %147, %146 : vector<8x128xf32>
    %cst_57 = arith.constant 5.000000e-01 : f32
    %149 = vector.broadcast %cst_57 : f32 to vector<8x128xf32>
    %150 = arith.addf %148, %149 : vector<8x128xf32>
    %151 = arith.mulf %144, %124 : vector<8x128xf32>
    %152 = arith.mulf %139, %145 : vector<8x128xf32>
    %153 = arith.addf %151, %152 : vector<8x128xf32>
    %154 = math.tanh %153 : vector<8x128xf32>
    %155 = arith.mulf %150, %154 : vector<8x128xf32>
    %c5_i32 = arith.constant 5 : i32
    %c8_i32_58 = arith.constant 8 : i32
    %156 = arith.muli %c5_i32, %c8_i32_58 : i32
    %157 = tpu.assume_multiple %156, 8 : i32
    %c0_59 = arith.constant 0 : index
    %c0_60 = arith.constant 0 : index
    %158 = vector.load %arg4[%c0_59, %c0_60] : memref<128x512xf32, #tpu.memory_space<vmem>>, vector<128x512xf32>
    %cst_61 = arith.constant dense<0.000000e+00> : vector<8x512xf32>
    %159 = tpu.matmul %155, %158, %cst_61 {dimension_numbers = #tpu.dot_dimension_numbers<[1], [0], [0], [1], [0, 0, 1, 1], [], []>} : vector<8x128xf32>, vector<128x512xf32>, vector<8x512xf32> -> vector<8x512xf32>
    %160 = arith.index_cast %157 : i32 to index
    %c0_62 = arith.constant 0 : index
    %161 = vector.load %arg8[%160, %c0_62] : memref<64x512xf32, #tpu.memory_space<vmem>>, vector<8x512xf32>
    %162 = arith.addf %159, %161 : vector<8x512xf32>
    %163 = math.tanh %162 : vector<8x512xf32>
    %164 = vector.extract_strided_slice %163 {offsets = [0, 0], sizes = [8, 128], strides = [1, 1]} : vector<8x512xf32> to vector<8x128xf32>
    %cst_63 = arith.constant 5.000000e-01 : f32
    %165 = vector.broadcast %cst_63 : f32 to vector<8x128xf32>
    %166 = arith.mulf %165, %164 : vector<8x128xf32>
    %cst_64 = arith.constant 5.000000e-01 : f32
    %167 = vector.broadcast %cst_64 : f32 to vector<8x128xf32>
    %168 = arith.addf %166, %167 : vector<8x128xf32>
    %169 = vector.extract_strided_slice %163 {offsets = [0, 128], sizes = [8, 128], strides = [1, 1]} : vector<8x512xf32> to vector<8x128xf32>
    %cst_65 = arith.constant 5.000000e-01 : f32
    %170 = vector.broadcast %cst_65 : f32 to vector<8x128xf32>
    %171 = arith.mulf %170, %169 : vector<8x128xf32>
    %cst_66 = arith.constant 5.000000e-01 : f32
    %172 = vector.broadcast %cst_66 : f32 to vector<8x128xf32>
    %173 = arith.addf %171, %172 : vector<8x128xf32>
    %174 = vector.extract_strided_slice %163 {offsets = [0, 256], sizes = [8, 128], strides = [1, 1]} : vector<8x512xf32> to vector<8x128xf32>
    %175 = vector.extract_strided_slice %163 {offsets = [0, 384], sizes = [8, 128], strides = [1, 1]} : vector<8x512xf32> to vector<8x128xf32>
    %cst_67 = arith.constant 5.000000e-01 : f32
    %176 = vector.broadcast %cst_67 : f32 to vector<8x128xf32>
    %177 = arith.mulf %176, %175 : vector<8x128xf32>
    %cst_68 = arith.constant 5.000000e-01 : f32
    %178 = vector.broadcast %cst_68 : f32 to vector<8x128xf32>
    %179 = arith.addf %177, %178 : vector<8x128xf32>
    %180 = arith.mulf %173, %153 : vector<8x128xf32>
    %181 = arith.mulf %168, %174 : vector<8x128xf32>
    %182 = arith.addf %180, %181 : vector<8x128xf32>
    %183 = math.tanh %182 : vector<8x128xf32>
    %184 = arith.mulf %179, %183 : vector<8x128xf32>
    %c6_i32 = arith.constant 6 : i32
    %c8_i32_69 = arith.constant 8 : i32
    %185 = arith.muli %c6_i32, %c8_i32_69 : i32
    %186 = tpu.assume_multiple %185, 8 : i32
    %c0_70 = arith.constant 0 : index
    %c0_71 = arith.constant 0 : index
    %187 = vector.load %arg4[%c0_70, %c0_71] : memref<128x512xf32, #tpu.memory_space<vmem>>, vector<128x512xf32>
    %cst_72 = arith.constant dense<0.000000e+00> : vector<8x512xf32>
    %188 = tpu.matmul %184, %187, %cst_72 {dimension_numbers = #tpu.dot_dimension_numbers<[1], [0], [0], [1], [0, 0, 1, 1], [], []>} : vector<8x128xf32>, vector<128x512xf32>, vector<8x512xf32> -> vector<8x512xf32>
    %189 = arith.index_cast %186 : i32 to index
    %c0_73 = arith.constant 0 : index
    %190 = vector.load %arg8[%189, %c0_73] : memref<64x512xf32, #tpu.memory_space<vmem>>, vector<8x512xf32>
    %191 = arith.addf %188, %190 : vector<8x512xf32>
    %192 = math.tanh %191 : vector<8x512xf32>
    %193 = vector.extract_strided_slice %192 {offsets = [0, 0], sizes = [8, 128], strides = [1, 1]} : vector<8x512xf32> to vector<8x128xf32>
    %cst_74 = arith.constant 5.000000e-01 : f32
    %194 = vector.broadcast %cst_74 : f32 to vector<8x128xf32>
    %195 = arith.mulf %194, %193 : vector<8x128xf32>
    %cst_75 = arith.constant 5.000000e-01 : f32
    %196 = vector.broadcast %cst_75 : f32 to vector<8x128xf32>
    %197 = arith.addf %195, %196 : vector<8x128xf32>
    %198 = vector.extract_strided_slice %192 {offsets = [0, 128], sizes = [8, 128], strides = [1, 1]} : vector<8x512xf32> to vector<8x128xf32>
    %cst_76 = arith.constant 5.000000e-01 : f32
    %199 = vector.broadcast %cst_76 : f32 to vector<8x128xf32>
    %200 = arith.mulf %199, %198 : vector<8x128xf32>
    %cst_77 = arith.constant 5.000000e-01 : f32
    %201 = vector.broadcast %cst_77 : f32 to vector<8x128xf32>
    %202 = arith.addf %200, %201 : vector<8x128xf32>
    %203 = vector.extract_strided_slice %192 {offsets = [0, 256], sizes = [8, 128], strides = [1, 1]} : vector<8x512xf32> to vector<8x128xf32>
    %204 = vector.extract_strided_slice %192 {offsets = [0, 384], sizes = [8, 128], strides = [1, 1]} : vector<8x512xf32> to vector<8x128xf32>
    %cst_78 = arith.constant 5.000000e-01 : f32
    %205 = vector.broadcast %cst_78 : f32 to vector<8x128xf32>
    %206 = arith.mulf %205, %204 : vector<8x128xf32>
    %cst_79 = arith.constant 5.000000e-01 : f32
    %207 = vector.broadcast %cst_79 : f32 to vector<8x128xf32>
    %208 = arith.addf %206, %207 : vector<8x128xf32>
    %209 = arith.mulf %202, %182 : vector<8x128xf32>
    %210 = arith.mulf %197, %203 : vector<8x128xf32>
    %211 = arith.addf %209, %210 : vector<8x128xf32>
    %212 = math.tanh %211 : vector<8x128xf32>
    %213 = arith.mulf %208, %212 : vector<8x128xf32>
    %c7_i32 = arith.constant 7 : i32
    %c8_i32_80 = arith.constant 8 : i32
    %214 = arith.muli %c7_i32, %c8_i32_80 : i32
    %215 = tpu.assume_multiple %214, 8 : i32
    %c0_81 = arith.constant 0 : index
    %c0_82 = arith.constant 0 : index
    %216 = vector.load %arg4[%c0_81, %c0_82] : memref<128x512xf32, #tpu.memory_space<vmem>>, vector<128x512xf32>
    %cst_83 = arith.constant dense<0.000000e+00> : vector<8x512xf32>
    %217 = tpu.matmul %213, %216, %cst_83 {dimension_numbers = #tpu.dot_dimension_numbers<[1], [0], [0], [1], [0, 0, 1, 1], [], []>} : vector<8x128xf32>, vector<128x512xf32>, vector<8x512xf32> -> vector<8x512xf32>
    %218 = arith.index_cast %215 : i32 to index
    %c0_84 = arith.constant 0 : index
    %219 = vector.load %arg8[%218, %c0_84] : memref<64x512xf32, #tpu.memory_space<vmem>>, vector<8x512xf32>
    %220 = arith.addf %217, %219 : vector<8x512xf32>
    %221 = math.tanh %220 : vector<8x512xf32>
    %222 = vector.extract_strided_slice %221 {offsets = [0, 0], sizes = [8, 128], strides = [1, 1]} : vector<8x512xf32> to vector<8x128xf32>
    %cst_85 = arith.constant 5.000000e-01 : f32
    %223 = vector.broadcast %cst_85 : f32 to vector<8x128xf32>
    %224 = arith.mulf %223, %222 : vector<8x128xf32>
    %cst_86 = arith.constant 5.000000e-01 : f32
    %225 = vector.broadcast %cst_86 : f32 to vector<8x128xf32>
    %226 = arith.addf %224, %225 : vector<8x128xf32>
    %227 = vector.extract_strided_slice %221 {offsets = [0, 128], sizes = [8, 128], strides = [1, 1]} : vector<8x512xf32> to vector<8x128xf32>
    %cst_87 = arith.constant 5.000000e-01 : f32
    %228 = vector.broadcast %cst_87 : f32 to vector<8x128xf32>
    %229 = arith.mulf %228, %227 : vector<8x128xf32>
    %cst_88 = arith.constant 5.000000e-01 : f32
    %230 = vector.broadcast %cst_88 : f32 to vector<8x128xf32>
    %231 = arith.addf %229, %230 : vector<8x128xf32>
    %232 = vector.extract_strided_slice %221 {offsets = [0, 256], sizes = [8, 128], strides = [1, 1]} : vector<8x512xf32> to vector<8x128xf32>
    %233 = vector.extract_strided_slice %221 {offsets = [0, 384], sizes = [8, 128], strides = [1, 1]} : vector<8x512xf32> to vector<8x128xf32>
    %cst_89 = arith.constant 5.000000e-01 : f32
    %234 = vector.broadcast %cst_89 : f32 to vector<8x128xf32>
    %235 = arith.mulf %234, %233 : vector<8x128xf32>
    %cst_90 = arith.constant 5.000000e-01 : f32
    %236 = vector.broadcast %cst_90 : f32 to vector<8x128xf32>
    %237 = arith.addf %235, %236 : vector<8x128xf32>
    %238 = arith.mulf %231, %211 : vector<8x128xf32>
    %239 = arith.mulf %226, %232 : vector<8x128xf32>
    %240 = arith.addf %238, %239 : vector<8x128xf32>
    %241 = math.tanh %240 : vector<8x128xf32>
    %242 = arith.mulf %237, %241 : vector<8x128xf32>
    %c7_i32_91 = arith.constant 7 : i32
    %c0_92 = arith.constant 0 : index
    %c0_93 = arith.constant 0 : index
    %243 = vector.load %arg4[%c0_92, %c0_93] : memref<128x512xf32, #tpu.memory_space<vmem>>, vector<128x512xf32>
    %cst_94 = arith.constant dense<0.000000e+00> : vector<8x512xf32>
    %244 = tpu.matmul %242, %243, %cst_94 {dimension_numbers = #tpu.dot_dimension_numbers<[1], [0], [0], [1], [0, 0, 1, 1], [], []>} : vector<8x128xf32>, vector<128x512xf32>, vector<8x512xf32> -> vector<8x512xf32>
    %c0_95 = arith.constant 0 : index
    %c0_96 = arith.constant 0 : index
    %245 = vector.load %arg3[%c0_95, %c0_96] : memref<1x512xf32, #tpu.memory_space<vmem>>, vector<1x512xf32>
    %246 = vector.broadcast %245 : vector<1x512xf32> to vector<8x512xf32>
    %247 = arith.addf %244, %246 : vector<8x512xf32>
    %248 = math.tanh %247 : vector<8x512xf32>
    %249 = vector.extract_strided_slice %248 {offsets = [0, 0], sizes = [8, 128], strides = [1, 1]} : vector<8x512xf32> to vector<8x128xf32>
    %cst_97 = arith.constant 5.000000e-01 : f32
    %250 = vector.broadcast %cst_97 : f32 to vector<8x128xf32>
    %251 = arith.mulf %250, %249 : vector<8x128xf32>
    %cst_98 = arith.constant 5.000000e-01 : f32
    %252 = vector.broadcast %cst_98 : f32 to vector<8x128xf32>
    %253 = arith.addf %251, %252 : vector<8x128xf32>
    %254 = vector.extract_strided_slice %248 {offsets = [0, 128], sizes = [8, 128], strides = [1, 1]} : vector<8x512xf32> to vector<8x128xf32>
    %cst_99 = arith.constant 5.000000e-01 : f32
    %255 = vector.broadcast %cst_99 : f32 to vector<8x128xf32>
    %256 = arith.mulf %255, %254 : vector<8x128xf32>
    %cst_100 = arith.constant 5.000000e-01 : f32
    %257 = vector.broadcast %cst_100 : f32 to vector<8x128xf32>
    %258 = arith.addf %256, %257 : vector<8x128xf32>
    %259 = vector.extract_strided_slice %248 {offsets = [0, 256], sizes = [8, 128], strides = [1, 1]} : vector<8x512xf32> to vector<8x128xf32>
    %260 = vector.extract_strided_slice %248 {offsets = [0, 384], sizes = [8, 128], strides = [1, 1]} : vector<8x512xf32> to vector<8x128xf32>
    %cst_101 = arith.constant 5.000000e-01 : f32
    %261 = vector.broadcast %cst_101 : f32 to vector<8x128xf32>
    %262 = arith.mulf %261, %260 : vector<8x128xf32>
    %cst_102 = arith.constant 5.000000e-01 : f32
    %263 = vector.broadcast %cst_102 : f32 to vector<8x128xf32>
    %264 = arith.addf %262, %263 : vector<8x128xf32>
    %265 = arith.mulf %258, %240 : vector<8x128xf32>
    %266 = arith.mulf %253, %259 : vector<8x128xf32>
    %267 = arith.addf %265, %266 : vector<8x128xf32>
    %268 = math.tanh %267 : vector<8x128xf32>
    %269 = arith.mulf %264, %268 : vector<8x128xf32>
    %c0_103 = arith.constant 0 : index
    %c0_104 = arith.constant 0 : index
    %270 = vector.load %arg5[%c0_103, %c0_104] : memref<1x128xf32, #tpu.memory_space<vmem>>, vector<1x128xf32>
    %271 = vector.broadcast %270 : vector<1x128xf32> to vector<8x128xf32>
    %272 = arith.mulf %269, %271 : vector<8x128xf32>
    %cst_105 = arith.constant dense<0.000000e+00> : vector<8xf32>
    %273 = vector.multi_reduction <add>, %272, %cst_105 [1] : vector<8x128xf32> to vector<8xf32>
    %274 = vector.shape_cast %273 : vector<8xf32> to vector<8x1xf32>
    %c0_106 = arith.constant 0 : index
    %c0_107 = arith.constant 0 : index
    %275 = vector.load %arg6[%c0_106, %c0_107] : memref<1x1xf32, #tpu.memory_space<vmem>>, vector<1x1xf32>
    %276 = vector.broadcast %275 : vector<1x1xf32> to vector<8x1xf32>
    %277 = arith.addf %274, %276 : vector<8x1xf32>
    %c0_108 = arith.constant 0 : index
    %c0_109 = arith.constant 0 : index
    %278 = vector.load %arg7[%c0_108, %c0_109] : memref<8x1xf32, #tpu.memory_space<vmem>>, vector<8x1xf32>
    tpu.vector_store %arg7[%c0_108, %c0_109], %277 {strides = array<i32>} : memref<8x1xf32, #tpu.memory_space<vmem>>, vector<8x1xf32>,
    return
  }
  func.func @transform_0(%arg0: i32) -> (i32, i32) {
    %c0_i32 = arith.constant 0 : i32
    %c0_i32_0 = arith.constant 0 : i32
    %c0_i32_1 = arith.constant 0 : i32
    return %c0_i32, %c0_i32_0 : i32, i32
  }
  func.func @transform_1(%arg0: i32) -> (i32, i32) {
    %c0_i32 = arith.constant 0 : i32
    %c0_i32_0 = arith.constant 0 : i32
    %c0_i32_1 = arith.constant 0 : i32
    return %c0_i32, %c0_i32_0 : i32, i32
  }
  func.func @transform_2(%arg0: i32) -> (i32, i32) {
    %c0_i32 = arith.constant 0 : i32
    %c0_i32_0 = arith.constant 0 : i32
    %c0_i32_1 = arith.constant 0 : i32
    return %c0_i32, %c0_i32_0 : i32, i32
  }
  func.func @transform_3(%arg0: i32) -> (i32, i32) {
    %c0_i32 = arith.constant 0 : i32
    %c0_i32_0 = arith.constant 0 : i32
    %c0_i32_1 = arith.constant 0 : i32
    return %c0_i32, %c0_i32_0 : i32, i32
  }
  func.func @transform_4(%arg0: i32) -> (i32, i32) {
    %c0_i32 = arith.constant 0 : i32
    %c0_i32_0 = arith.constant 0 : i32
    %c0_i32_1 = arith.constant 0 : i32
    return %c0_i32, %c0_i32_0 : i32, i32
  }
  func.func @transform_5(%arg0: i32) -> (i32, i32) {
    %c0_i32 = arith.constant 0 : i32
    %c0_i32_0 = arith.constant 0 : i32
    %c0_i32_1 = arith.constant 0 : i32
    return %c0_i32, %c0_i32_0 : i32, i32
  }
  func.func @transform_6(%arg0: i32) -> (i32, i32) {
    %c0_i32 = arith.constant 0 : i32
    %c0_i32_0 = arith.constant 0 : i32
    %c0_i32_1 = arith.constant 0 : i32
    return %c0_i32, %c0_i32_0 : i32, i32
  }
}

</mosaic_0001>

<bundles_post_ra>
// kernel: tpu_custom_call.1
= control target key start
LH: loop header
LB: loop body
LE: loop exit
PB: predicated region body
PF: predicated region fallthrough
CT: control target
= control target key end

     0   :  { %s2287_s0 = inlined_call_operand.vmem [shape: f32[64,1], index: 0, kind: input, shape index: {}]   ;;  %s2288_s1 = inlined_call_operand.vmem [shape: f32[1,512], index: 1, kind: input, shape index: {}]   ;;  %s2289_s2 = inlined_call_operand.vmem [shape: f32[1,512], index: 2, kind: input, shape index: {}]   ;;  %s2290_s3 = inlined_call_operand.hbm [shape: f32[128,512], index: 3, kind: input, shape index: {}]   ;;  %s2291_s4 = inlined_call_operand.vmem [shape: f32[1,128], index: 4, kind: input, shape index: {}]   ;;  %s2292_s5 = inlined_call_operand.<no memory space> [shape: f32[1,1], index: 5, kind: input, shape index: {}]   ;;  %s2293_s6 = inlined_call_operand.vmem [shape: f32[8,1], index: 6, kind: output, shape index: {}]  }
   0x1   :  { %v11_v0 = vstv %s2292_s5 }
   0x2   :  { %12 = vst [vmem:[#allocation3] sm:$0x1] %v11_v0 }
   0x3   :  { %13 = vsyncpa [#allocation5], 0  ;;  %s24_s25 = sshll.u32 %s2290_s3, 4  ;;  %s1331_s26 = smov [#allocation4]   ;;  %s25_s25 = int_to_ptr.hbm [resolvable:$true] %s24_s25 }
   0x4   :  { %s26_s27 = sshll.u32 %s1331_s26, 4  ;;  %s1332_s28 = smov 512   ;;  %s27_s27 = int_to_ptr.vmem [resolvable:$true] %s26_s27 }
   0x5   :  { %s1333_s29 = smov 32  }
   0x6   :  { %32 = dma.hbm_to_vmem [thread:$0]  %s25_s25, 8192, %s27_s27, [#allocation5], %s1332_s28, %s1332_s28, %s1333_s29  }
   0x7   :  { %1329 = dma.done.wait [#allocation5], 8192  }
   0x8   :  { %1330 = vsyncadd [#allocation5], 4294959104  ;;  %v1334_v1 = vmov 0   ;;  %v41_v2 = vld [vmem:[%s2287_s0] sm:$0xff]  ;;  %v1382_v4 = vld [vmem:[#allocation4 + $0x1e8] sm:$0xff]  ;;  %vm1126_vm1 = vcmask 7168  }
   0x9   :  { %1146 = vset.pattern.permute.xlu0 %v1334_v1  ;;  %1147 = vset.pattern.permute.xlu1 %v1334_v1  ;;  %v1380_v3 = vld [vmem:[#allocation4 + $0x1e0] sm:$0xff]  ;;  %v1384_v5 = vld [vmem:[#allocation4 + $0x1f0] sm:$0xff]  ;;  %v1388_v6 = vld [vmem:[#allocation4 + $0x1f8] sm:$0xff] }
   0xa   :  { %1148 = vset.pattern.permute.xlu2 %v1334_v1  ;;  %52 = vperm.xlu0 %1146, %v41_v2   ;;  %v42_v7 = vld [vmem:[%s2287_s0 + $0x8] sm:$0xff]  ;;  %v47_v8 = vld [vmem:[%s2287_s0 + $0x30] sm:$0xff]  ;;  %v1406_v12 = vld [vmem:[#allocation4 + $0x1d8] sm:$0xff] }
   0xb   :  { %302 = vmatpush.msra.mxu0 %v1380_v3  ;;  %322 = vmatpush.msra.mxu1 %v1382_v4  ;;  %v1398_v9 = vld [vmem:[#allocation4 + $0x1c0] sm:$0xff]  ;;  %v1400_v10 = vld [vmem:[#allocation4 + $0x1c8] sm:$0xff]  ;;  %v1402_v11 = vld [vmem:[#allocation4 + $0x1d0] sm:$0xff] }
   0xc   :  { %342 = vmatpush.msra.mxu2 %v1384_v5  ;;  %362 = vmatpush.msra.mxu3 %v1388_v6  ;;  %v1410_v13 = vld [vmem:[#allocation4 + $0x1a0] sm:$0xff]  ;;  %v1412_v14 = vld [vmem:[#allocation4 + $0x1a8] sm:$0xff]  ;;  %v1414_v15 = vld [vmem:[#allocation4 + $0x1b0] sm:$0xff] }
   0xd   :  { %303 = vmatpush.msra.mxu0 %v1398_v9  ;;  %323 = vmatpush.msra.mxu1 %v1400_v10  ;;  %v1418_v16 = vld [vmem:[#allocation4 + $0x1b8] sm:$0xff]  ;;  %v1422_v17 = vld [vmem:[#allocation4 + $0x180] sm:$0xff]  ;;  %v1424_v18 = vld [vmem:[#allocation4 + $0x188] sm:$0xff] }
   0xe   :  { %343 = vmatpush.msra.mxu2 %v1402_v11  ;;  %363 = vmatpush.msra.mxu3 %v1406_v12  ;;  %v1426_v19 = vld [vmem:[#allocation4 + $0x190] sm:$0xff]  ;;  %v1430_v20 = vld [vmem:[#allocation4 + $0x198] sm:$0xff]  ;;  %v1434_v21 = vld [vmem:[#allocation4 + $0x160] sm:$0xff] }
   0xf   :  { %304 = vmatpush.msra.mxu0 %v1410_v13  ;;  %324 = vmatpush.msra.mxu1 %v1412_v14  ;;  %v1436_v22 = vld [vmem:[#allocation4 + $0x168] sm:$0xff]  ;;  %v1438_v23 = vld [vmem:[#allocation4 + $0x170] sm:$0xff]  ;;  %v1442_v24 = vld [vmem:[#allocation4 + $0x178] sm:$0xff] }
  0x10   :  { %344 = vmatpush.msra.mxu2 %v1414_v15  ;;  %364 = vmatpush.msra.mxu3 %v1418_v16  ;;  %v1446_v25 = vld [vmem:[#allocation4 + $0x140] sm:$0xff]  ;;  %v1448_v26 = vld [vmem:[#allocation4 + $0x148] sm:$0xff]  ;;  %v1450_v27 = vld [vmem:[#allocation4 + $0x150] sm:$0xff] }
  0x11   :  { %305 = vmatpush.msra.mxu0 %v1422_v17  ;;  %325 = vmatpush.msra.mxu1 %v1424_v18  ;;  %v1454_v28 = vld [vmem:[#allocation4 + $0x158] sm:$0xff]  ;;  %v1458_v29 = vld [vmem:[#allocation4 + $0x120] sm:$0xff]  ;;  %v1460_v30 = vld [vmem:[#allocation4 + $0x128] sm:$0xff] }
  0x12   :  { %57 = vperm.xlu0 %1146, %v42_v7   ;;  %345 = vmatpush.msra.mxu2 %v1426_v19  ;;  %v1462_v31 = vld [vmem:[#allocation4 + $0x130] sm:$0xff]  ;;  %v1466_v32 = vld [vmem:[#allocation4 + $0x138] sm:$0xff]  ;;  %v1470_v33 = vld [vmem:[#allocation4 + $0x100] sm:$0xff] }
  0x13   :  { %365 = vmatpush.msra.mxu3 %v1430_v20  ;;  %306 = vmatpush.msra.mxu0 %v1434_v21  ;;  %v1472_v34 = vld [vmem:[#allocation4 + $0x108] sm:$0xff]  ;;  %v1474_v35 = vld [vmem:[#allocation4 + $0x110] sm:$0xff]  ;;  %v1478_v36 = vld [vmem:[#allocation4 + $0x118] sm:$0xff] }
  0x14   :  { %326 = vmatpush.msra.mxu1 %v1436_v22  ;;  %346 = vmatpush.msra.mxu2 %v1438_v23  ;;  %v1482_v37 = vld [vmem:[#allocation4 + $0xe0] sm:$0xff]  ;;  %v1484_v38 = vld [vmem:[#allocation4 + $0xe8] sm:$0xff]  ;;  %v1486_v39 = vld [vmem:[#allocation4 + $0xf0] sm:$0xff] }
  0x15   :  { %366 = vmatpush.msra.mxu3 %v1442_v24  ;;  %307 = vmatpush.msra.mxu0 %v1446_v25  ;;  %v1490_v40 = vld [vmem:[#allocation4 + $0xf8] sm:$0xff]  ;;  %v1494_v41 = vld [vmem:[#allocation4 + $0xc0] sm:$0xff]  ;;  %v1496_v42 = vld [vmem:[#allocation4 + $0xc8] sm:$0xff] }
  0x16   :  { %327 = vmatpush.msra.mxu1 %v1448_v26  ;;  %347 = vmatpush.msra.mxu2 %v1450_v27  ;;  %v1498_v43 = vld [vmem:[#allocation4 + $0xd0] sm:$0xff]  ;;  %v1502_v44 = vld [vmem:[#allocation4 + $0xd8] sm:$0xff]  ;;  %v1504_v45 = vld [vmem:[#allocation4 + $0xa0] sm:$0xff] }
  0x17   :  { %367 = vmatpush.msra.mxu3 %v1454_v28  ;;  %308 = vmatpush.msra.mxu0 %v1458_v29  ;;  %v1506_v46 = vld [vmem:[#allocation4 + $0xa8] sm:$0xff]  ;;  %v1510_v47 = vld [vmem:[#allocation4 + $0xb0] sm:$0xff]  ;;  %v1512_v48 = vld [vmem:[#allocation4 + $0xb8] sm:$0xff] }
  0x18   :  { %328 = vmatpush.msra.mxu1 %v1460_v30  ;;  %348 = vmatpush.msra.mxu2 %v1462_v31  ;;  %2410 = vst [vmem:[#allocation7_spill] sm:$0xff] %v1506_v46  ;;  %v1514_v49 = vld [vmem:[#allocation4 + $0x80] sm:$0xff]  ;;  %v1518_v50 = vld [vmem:[#allocation4 + $0x88] sm:$0xff]  ;;  %v1520_v51 = vld [vmem:[#allocation4 + $0x90] sm:$0xff] }
  0x19   :  { %368 = vmatpush.msra.mxu3 %v1466_v32  ;;  %309 = vmatpush.msra.mxu0 %v1470_v33  ;;  %2411 = vst [vmem:[#allocation8_spill] sm:$0xff] %v1510_v47  ;;  %v1522_v52 = vld [vmem:[#allocation4 + $0x98] sm:$0xff]  ;;  %v1526_v53 = vld [vmem:[#allocation4 + $0x60] sm:$0xff]  ;;  %v1528_v54 = vld [vmem:[#allocation4 + $0x68] sm:$0xff] }
  0x1a   :  { %82 = vperm.xlu0 %1146, %v47_v8   ;;  %329 = vmatpush.msra.mxu1 %v1472_v34  ;;  %2412 = vst [vmem:[#allocation9_spill] sm:$0xff] %v1512_v48  ;;  %v1532_v55 = vld [vmem:[#allocation4 + $0x70] sm:$0xff]  ;;  %v1534_v56 = vld [vmem:[#allocation4 + $0x78] sm:$0xff]  ;;  %v1541_v58 = vld [vmem:[#allocation4 + $0x40] sm:$0xff] }
  0x1b   :  { %349 = vmatpush.msra.mxu2 %v1474_v35  ;;  %369 = vmatpush.msra.mxu3 %v1478_v36  ;;  %2413 = vst [vmem:[#allocation10_spill] sm:$0xff] %v1514_v49  ;;  %v49_v57 = vld [vmem:[%s2288_s1] sm:$0xf]  ;;  %v1543_v59 = vld [vmem:[#allocation4 + $0x48] sm:$0xff]  ;;  %v1547_v60 = vld [vmem:[#allocation4 + $0x50] sm:$0xff] }
  0x1c   :  { %310 = vmatpush.msra.mxu0 %v1482_v37  ;;  %330 = vmatpush.msra.mxu1 %v1484_v38  ;;  %2414 = vst [vmem:[#allocation11_spill] sm:$0xff] %v1518_v50  ;;  %v1549_v61 = vld [vmem:[#allocation4 + $0x58] sm:$0xff]  ;;  %v1556_v63 = vld [vmem:[#allocation4 + $0x20] sm:$0xff]  ;;  %v1558_v0 = vld [vmem:[#allocation4 + $0x28] sm:$0xff]  ;;  %v1560_v1 = vperm.slane %v49_v57, 0  ;;  %v1562_v2 = vperm.slane %v49_v57, 1 }
  0x1d   :  { %350 = vmatpush.msra.mxu2 %v1486_v39  ;;  %370 = vmatpush.msra.mxu3 %v1490_v40  ;;  %2415 = vst [vmem:[#allocation12_spill] sm:$0xff] %v1520_v51  ;;  %v131_v62 = vld [vmem:[%s2289_s2] sm:$0xf]  ;;  %v1564_v7 = vperm.slane %v49_v57, 2  ;;  %v1568_v8 = vld [vmem:[#allocation4 + $0x30] sm:$0xff] }
  0x1e   :  { %311 = vmatpush.msra.mxu0 %v1494_v41  ;;  %331 = vmatpush.msra.mxu1 %v1496_v42  ;;  %2416 = vst [vmem:[#allocation13_spill] sm:$0xff] %v1522_v52 }
  0x1f   :  { %351 = vmatpush.msra.mxu2 %v1498_v43  ;;  %371 = vmatpush.msra.mxu3 %v1502_v44  ;;  %2417 = vst [vmem:[#allocation14_spill] sm:$0xff] %v1526_v53 }
  0x20   :  { %312 = vmatpush.msra.mxu0 %v1504_v45  ;;  %332 = vmatpush.msra.mxu1 %v1506_v46  ;;  %2418 = vst [vmem:[#allocation15_spill] sm:$0xff] %v1528_v54 }
  0x21   :  { %352 = vmatpush.msra.mxu2 %v1510_v47  ;;  %372 = vmatpush.msra.mxu3 %v1512_v48  ;;  %2419 = vst [vmem:[#allocation16_spill] sm:$0xff] %v1532_v55 }
  0x22   :  { %313 = vmatpush.msra.mxu0 %v1514_v49  ;;  %333 = vmatpush.msra.mxu1 %v1518_v50  ;;  %2420 = vst [vmem:[#allocation17_spill] sm:$0xff] %v1534_v56 }
  0x23   :  { %353 = vmatpush.msra.mxu2 %v1520_v51  ;;  %373 = vmatpush.msra.mxu3 %v1522_v52  ;;  %2421 = vst [vmem:[#allocation18_spill] sm:$0xff] %v1541_v58  ;;  %v1586_v52 = vperm.slane %v49_v57, 3 }
  0x24   :  { %2422 = vst [vmem:[#allocation19_spill] sm:$0xff] %v1543_v59  ;;  %314 = vmatpush.msra.mxu0 %v1526_v53  ;;  %334 = vmatpush.msra.mxu1 %v1528_v54  ;;  %v1570_v54 = vld [vmem:[#allocation4 + $0x38] sm:$0xff]  ;;  %v1578_v53 = vperm.slane %v131_v62, 1 }
  0x25   :  { %2423 = vst [vmem:[#allocation20_spill] sm:$0xff] %v1547_v60  ;;  %354 = vmatpush.msra.mxu2 %v1532_v55  ;;  %374 = vmatpush.msra.mxu3 %v1534_v56  ;;  %v1574_v56 = vld [vmem:[#allocation4] sm:$0xff]  ;;  %v1576_v55 = vperm.slane %v131_v62, 0 }
  0x26   :  { %2424 = vst [vmem:[#allocation21_spill] sm:$0xff] %v1549_v61  ;;  %315 = vmatpush.msra.mxu0 %v1541_v58  ;;  %335 = vmatpush.msra.mxu1 %v1543_v59  ;;  %v1582_v58 = vld [vmem:[#allocation4 + $0x8] sm:$0xff]  ;;  %v1584_v59 = vld [vmem:[#allocation4 + $0x10] sm:$0xff] }
  0x27   :  { %2425 = vst [vmem:[#allocation22_spill] sm:$0xff] %v1556_v63  ;;  %355 = vmatpush.msra.mxu2 %v1547_v60  ;;  %375 = vmatpush.msra.mxu3 %v1549_v61  ;;  %v1590_v61 = vld [vmem:[#allocation4 + $0x18] sm:$0xff]  ;;  %v1592_v60 = vperm.slane %v131_v62, 2 }
  0x28   :  { %2426 = vst [vmem:[#allocation23_spill] sm:$0xff] %v1558_v0  ;;  %316 = vmatpush.msra.mxu0 %v1556_v63  ;;  %336 = vmatpush.msra.mxu1 %v1558_v0 }
  0x29   :  { %2427 = vst [vmem:[#allocation24_spill] sm:$0xff] %v1560_v1  ;;  %356 = vmatpush.msra.mxu2 %v1568_v8  ;;  %376 = vmatpush.msra.mxu3 %v1570_v54 }
  0x2a   :  { %2428 = vst [vmem:[#allocation25_spill] sm:$0xff] %v1562_v2  ;;  %317 = vmatpush.msra.mxu0 %v1574_v56  ;;  %337 = vmatpush.msra.mxu1 %v1582_v58 }
  0x2b   :  { %2429 = vst [vmem:[#allocation26_spill] sm:$0xff] %v1564_v7  ;;  %357 = vmatpush.msra.mxu2 %v1584_v59  ;;  %377 = vmatpush.msra.mxu3 %v1590_v61 }
  0x2c   :  { %2430 = vst [vmem:[#allocation27_spill] sm:$0xff] %v1568_v8  ;;  %404 = vmatpush.msrb.mxu0 %v1380_v3  ;;  %424 = vmatpush.msrb.mxu1 %v1382_v4 }
  0x2d   :  { %2431 = vst [vmem:[#allocation28_spill] sm:$0xff] %v1570_v54  ;;  %444 = vmatpush.msrb.mxu2 %v1384_v5  ;;  %464 = vmatpush.msrb.mxu3 %v1388_v6 }
  0x2e   :  { %2432 = vst [vmem:[#allocation29_spill] sm:$0xff] %v1574_v56  ;;  %405 = vmatpush.msrb.mxu0 %v1398_v9  ;;  %425 = vmatpush.msrb.mxu1 %v1400_v10 }
  0x2f   :  { %2433 = vst [vmem:[#allocation30_spill] sm:$0xff] %v1576_v55  ;;  %445 = vmatpush.msrb.mxu2 %v1402_v11  ;;  %465 = vmatpush.msrb.mxu3 %v1406_v12 }
  0x30   :  { %2434 = vst [vmem:[#allocation31_spill] sm:$0xff] %v1578_v53  ;;  %406 = vmatpush.msrb.mxu0 %v1410_v13  ;;  %426 = vmatpush.msrb.mxu1 %v1412_v14 }
  0x31   :  { %2435 = vst [vmem:[#allocation32_spill] sm:$0xff] %v1582_v58  ;;  %446 = vmatpush.msrb.mxu2 %v1414_v15  ;;  %466 = vmatpush.msrb.mxu3 %v1418_v16 }
  0x32   :  { %2436 = vst [vmem:[#allocation33_spill] sm:$0xff] %v1584_v59  ;;  %407 = vmatpush.msrb.mxu0 %v1422_v17  ;;  %427 = vmatpush.msrb.mxu1 %v1424_v18 }
  0x33   :  { %2437 = vst [vmem:[#allocation34_spill] sm:$0xff] %v1586_v52  ;;  %447 = vmatpush.msrb.mxu2 %v1426_v19  ;;  %467 = vmatpush.msrb.mxu3 %v1430_v20 }
  0x34   :  { %2438 = vst [vmem:[#allocation35_spill] sm:$0xff] %v1590_v61  ;;  %408 = vmatpush.msrb.mxu0 %v1434_v21  ;;  %428 = vmatpush.msrb.mxu1 %v1436_v22 }
  0x35   :  { %2439 = vst [vmem:[#allocation36_spill] sm:$0xff] %v1592_v60  ;;  %448 = vmatpush.msrb.mxu2 %v1438_v23  ;;  %468 = vmatpush.msrb.mxu3 %v1442_v24 }
  0x36   :  { %409 = vmatpush.msrb.mxu0 %v1446_v25  ;;  %429 = vmatpush.msrb.mxu1 %v1448_v26 }
  0x37   :  { %449 = vmatpush.msrb.mxu2 %v1450_v27  ;;  %469 = vmatpush.msrb.mxu3 %v1454_v28 }
  0x38   :  { %410 = vmatpush.msrb.mxu0 %v1458_v29  ;;  %430 = vmatpush.msrb.mxu1 %v1460_v30 }
  0x39   :  { %450 = vmatpush.msrb.mxu2 %v1462_v31  ;;  %470 = vmatpush.msrb.mxu3 %v1466_v32 }
  0x3a   :  { %411 = vmatpush.msrb.mxu0 %v1470_v33  ;;  %431 = vmatpush.msrb.mxu1 %v1472_v34 }
  0x3b   :  { %451 = vmatpush.msrb.mxu2 %v1474_v35  ;;  %471 = vmatpush.msrb.mxu3 %v1478_v36 }
  0x3c   :  { %412 = vmatpush.msrb.mxu0 %v1482_v37  ;;  %432 = vmatpush.msrb.mxu1 %v1484_v38 }
  0x3d   :  { %452 = vmatpush.msrb.mxu2 %v1486_v39  ;;  %472 = vmatpush.msrb.mxu3 %v1490_v40 }
  0x3e   :  { %413 = vmatpush.msrb.mxu0 %v1494_v41  ;;  %433 = vmatpush.msrb.mxu1 %v1496_v42 }
  0x3f   :  { %453 = vmatpush.msrb.mxu2 %v1498_v43  ;;  %473 = vmatpush.msrb.mxu3 %v1502_v44 }
  0x40   :  { %414 = vmatpush.msrb.mxu0 %v1504_v45  ;;  %434 = vmatpush.msrb.mxu1 %v1506_v46 }
  0x41   :  { %454 = vmatpush.msrb.mxu2 %v1510_v47  ;;  %474 = vmatpush.msrb.mxu3 %v1512_v48 }
  0x42   :  { %415 = vmatpush.msrb.mxu0 %v1514_v49  ;;  %v2452_v49 = vld [vmem:[#allocation21_spill] sm:$0xff] }
  0x7c   :  { %v53_v51 = vpop.permute.xlu0 %52 }
  0x7d   :  { %v99_v50 = vmul.f32 %v1560_v1, %v53_v51  ;;  %v100_v63 = vmul.f32 %v1562_v2, %v53_v51  ;;  %v101_v0 = vmul.f32 %v1564_v7, %v53_v51  ;;  %v1605_v1 = vperm.slane %v131_v62, 3 }
  0x7e   :  { %v102_v7 = vmul.f32 %v1586_v52, %v53_v51  ;;  %v2448_v52 = vld [vmem:[#allocation17_spill] sm:$0xff] }
  0x7f   :  { %v141_v57 = vadd.f32 %v1576_v55, %v99_v50  ;;  %v142_v54 = vadd.f32 %v1578_v53, %v100_v63  ;;  %2440 = vst [vmem:[#allocation37_spill] sm:$0xff] %v1605_v1  ;;  %v143_v2 = vadd.f32 %v1592_v60, %v101_v0  ;;  %v205_v50 = vlaneseq  ;;  %v2447_v60 = vld [vmem:[#allocation16_spill] sm:$0xff]  ;;  %v2450_v55 = vld [vmem:[#allocation19_spill] sm:$0xff] }
  0x80   :  { %v144_v51 = vadd.f32 %v1605_v1, %v102_v7  ;;  %v2446_v1 = vld [vmem:[#allocation15_spill] sm:$0xff] }
  0x81   :  { %1151 = vtanh.f32 %v141_v57  ;;  %v206_v62 = vand.u32 127, %v205_v50 }
  0x82   :  { %1153 = vtanh.f32 %v142_v54 }
  0x83   :  { %1155 = vtanh.f32 %v143_v2  ;;  %vm207_vm0 = vcmp.lt.s32.totalorder %v206_v62, 64 }
  0x84   :  { %1157 = vtanh.f32 %v144_v51 }
  0x87   :  { %v1152_v54 = vpop.eup %1151 }
  0x88   :  { %v1154_v63 = vpop.eup %1153  ;;  %v218_v0 = vmul.f32 0.5, %v1152_v54 }
  0x89   :  { %v220_v2 = vmul.f32 0.5, %v1154_v63  ;;  %v1156_v57 = vpop.eup %1155  ;;  %v1335_v63 = vmov 0.0  }
  0x8a   :  { %v219_v7 = vadd.f32 0.5, %v218_v0  ;;  %v1140_v0 = vsel %vm207_vm0, 1.0, %v1335_v63  ;;  %v1158_v62 = vpop.eup %1157  ;;  %v2443_v63 = vld [vmem:[#allocation12_spill] sm:$0xff] }
  0x8b   :  { %v221_v50 = vadd.f32 0.5, %v220_v2  ;;  %455 = vmatpush.msrb.mxu2 %v2443_v63 }
  0x8c   :  { %v225_v54 = vmul.f32 %v1156_v57, %v219_v7  ;;  %v222_v57 = vmul.f32 0.5, %v1158_v62  ;;  %v2444_v62 = vld [vmem:[#allocation13_spill] sm:$0xff] }
  0x8d   :  { %v224_v51 = vmul.f32 0.0, %v221_v50  ;;  %475 = vmatpush.msrb.mxu3 %v2444_v62  ;;  %456 = vmatpush.msrb.mxu2 %v2447_v60 }
  0x8e   :  { %v223_v50 = vadd.f32 0.5, %v222_v57  ;;  %v2449_v57 = vld [vmem:[#allocation18_spill] sm:$0xff] }
  0x8f   :  { %v226_v2 = vadd.f32 %v225_v54, %v224_v51  ;;  %v2442_v54 = vld [vmem:[#allocation11_spill] sm:$0xff]  ;;  %476 = vmatpush.msrb.mxu3 %v2448_v52  ;;  %v2455_v52 = vld [vmem:[#allocation28_spill] sm:$0xff] }
  0x90   :  { %435 = vmatpush.msrb.mxu1 %v2442_v54  ;;  %v2451_v54 = vld [vmem:[#allocation20_spill] sm:$0xff] }
  0x91   :  { %1159 = vtanh.f32 %v226_v2  ;;  %v1642_v7 = vmul.f32 %v1140_v0, %v226_v2  ;;  %457 = vmatpush.msrb.mxu2 %v2451_v54  ;;  %477 = vmatpush.msrb.mxu3 %v2452_v49 }
  0x92   :  { %436 = vmatpush.msrb.mxu1 %v2446_v1 }
  0x93   :  { %2441 = vst [vmem:[#allocation38_spill] sm:$0xff] %v1642_v7  ;;  %v2445_v7 = vld [vmem:[#allocation14_spill] sm:$0xff]  ;;  %458 = vmatpush.msrb.mxu2 %v1568_v8  ;;  %478 = vmatpush.msrb.mxu3 %v2455_v52 }
  0x94   :  { %416 = vmatpush.msrb.mxu0 %v2445_v7  ;;  %437 = vmatpush.msrb.mxu1 %v2450_v55 }
  0x95   :  { %459 = vmatpush.msrb.mxu2 %v1584_v59  ;;  %479 = vmatpush.msrb.mxu3 %v1590_v61 }
  0x96   :  { %417 = vmatpush.msrb.mxu0 %v2449_v57 }
  0x97   :  { %v1160_v51 = vpop.eup %1159 }
  0x98   :  { %v228_v2 = vmul.f32 %v1160_v51, %v223_v50  ;;  %v2453_v50 = vld [vmem:[#allocation22_spill] sm:$0xff]  ;;  %v2454_v51 = vld [vmem:[#allocation23_spill] sm:$0xff] }
  0x99   :  { %418 = vmatpush.msrb.mxu0 %v2453_v50  ;;  %438 = vmatpush.msrb.mxu1 %v2454_v51 }
  0x9a   :  { %v229_v53 = vmul.f32 %v1140_v0, %v228_v2  ;;  %v2457_v0 = vld [vmem:[#allocation11_spill] sm:$0xff]  ;;  %v2458_v2 = vld [vmem:[#allocation17_spill] sm:$0xff] }
  0x9b   :  { %419 = vmatpush.msrb.mxu0 %v1574_v56  ;;  %439 = vmatpush.msrb.mxu1 %v1582_v58 }
  0x9c   :  { %318 = vmatmul.f32.vlgmr.msra.gmra.mxu0 %v229_v53  ;;  %338 = vmatmul.f32.vlgmr.msra.gmra.mxu1 %v229_v53 }
  0x9d   :  { %358 = vmatmul.f32.vlgmr.msra.gmra.mxu2 %v229_v53  ;;  %378 = vmatmul.f32.vlgmr.msra.gmra.mxu3 %v229_v53  ;;  %v2456_v53 = vld [vmem:[#allocation10_spill] sm:$0xff] }
  0x9e   :  { %506 = vmatpush.msra.mxu0 %v1380_v3  ;;  %526 = vmatpush.msra.mxu1 %v1382_v4 }
  0x9f   :  { %546 = vmatpush.msra.mxu2 %v1384_v5  ;;  %566 = vmatpush.msra.mxu3 %v1388_v6 }
  0xa0   :  { %507 = vmatpush.msra.mxu0 %v1398_v9  ;;  %527 = vmatpush.msra.mxu1 %v1400_v10 }
  0xa1   :  { %547 = vmatpush.msra.mxu2 %v1402_v11  ;;  %567 = vmatpush.msra.mxu3 %v1406_v12 }
  0xa2   :  { %508 = vmatpush.msra.mxu0 %v1410_v13  ;;  %528 = vmatpush.msra.mxu1 %v1412_v14 }
  0xa3   :  { %548 = vmatpush.msra.mxu2 %v1414_v15  ;;  %568 = vmatpush.msra.mxu3 %v1418_v16 }
  0xa4   :  { %509 = vmatpush.msra.mxu0 %v1422_v17  ;;  %529 = vmatpush.msra.mxu1 %v1424_v18 }
  0xa5   :  { %549 = vmatpush.msra.mxu2 %v1426_v19  ;;  %569 = vmatpush.msra.mxu3 %v1430_v20 }
  0xa6   :  { %510 = vmatpush.msra.mxu0 %v1434_v21  ;;  %530 = vmatpush.msra.mxu1 %v1436_v22 }
  0xa7   :  { %550 = vmatpush.msra.mxu2 %v1438_v23  ;;  %570 = vmatpush.msra.mxu3 %v1442_v24 }
  0xa8   :  { %511 = vmatpush.msra.mxu0 %v1446_v25  ;;  %531 = vmatpush.msra.mxu1 %v1448_v26 }
  0xa9   :  { %551 = vmatpush.msra.mxu2 %v1450_v27  ;;  %571 = vmatpush.msra.mxu3 %v1454_v28 }
  0xaa   :  { %512 = vmatpush.msra.mxu0 %v1458_v29  ;;  %532 = vmatpush.msra.mxu1 %v1460_v30 }
  0xab   :  { %552 = vmatpush.msra.mxu2 %v1462_v31  ;;  %572 = vmatpush.msra.mxu3 %v1466_v32 }
  0xac   :  { %513 = vmatpush.msra.mxu0 %v1470_v33  ;;  %533 = vmatpush.msra.mxu1 %v1472_v34 }
  0xad   :  { %553 = vmatpush.msra.mxu2 %v1474_v35  ;;  %573 = vmatpush.msra.mxu3 %v1478_v36 }
  0xae   :  { %514 = vmatpush.msra.mxu0 %v1482_v37  ;;  %534 = vmatpush.msra.mxu1 %v1484_v38 }
  0xaf   :  { %554 = vmatpush.msra.mxu2 %v1486_v39  ;;  %574 = vmatpush.msra.mxu3 %v1490_v40 }
  0xb0   :  { %515 = vmatpush.msra.mxu0 %v1494_v41  ;;  %535 = vmatpush.msra.mxu1 %v1496_v42 }
  0xb1   :  { %555 = vmatpush.msra.mxu2 %v1498_v43  ;;  %575 = vmatpush.msra.mxu3 %v1502_v44 }
  0xb2   :  { %516 = vmatpush.msra.mxu0 %v1504_v45  ;;  %536 = vmatpush.msra.mxu1 %v1506_v46 }
  0xb3   :  { %556 = vmatpush.msra.mxu2 %v1510_v47  ;;  %576 = vmatpush.msra.mxu3 %v1512_v48 }
  0xb4   :  { %517 = vmatpush.msra.mxu0 %v2456_v53  ;;  %537 = vmatpush.msra.mxu1 %v2457_v0 }
  0xb5   :  { %557 = vmatpush.msra.mxu2 %v2443_v63  ;;  %577 = vmatpush.msra.mxu3 %v2444_v62 }
  0xb6   :  { %518 = vmatpush.msra.mxu0 %v2445_v7  ;;  %538 = vmatpush.msra.mxu1 %v2446_v1  ;;  %v2463_v7 = vld [vmem:[#allocation26_spill] sm:$0xff] }
  0xb7   :  { %558 = vmatpush.msra.mxu2 %v2447_v60  ;;  %578 = vmatpush.msra.mxu3 %v2458_v2  ;;  %v2462_v2 = vld [vmem:[#allocation31_spill] sm:$0xff] }
  0xb8   :  { %519 = vmatpush.msra.mxu0 %v2449_v57  ;;  %539 = vmatpush.msra.mxu1 %v2450_v55  ;;  %v2460_v55 = vld [vmem:[#allocation25_spill] sm:$0xff]  ;;  %v2461_v57 = vld [vmem:[#allocation30_spill] sm:$0xff] }
  0xb9   :  { %559 = vmatpush.msra.mxu2 %v2451_v54  ;;  %579 = vmatpush.msra.mxu3 %v2452_v49  ;;  %v43_v49 = vld [vmem:[%s2287_s0 + $0x10] sm:$0xff]  ;;  %v58_v54 = vpop.permute.xlu0 %57 }
  0xba   :  { %520 = vmatpush.msra.mxu0 %v2453_v50  ;;  %540 = vmatpush.msra.mxu1 %v2454_v51  ;;  %v2459_v50 = vld [vmem:[#allocation24_spill] sm:$0xff]  ;;  %v105_v62 = vmul.f32 %v2463_v7, %v58_v54 }
  0xbb   :  { %560 = vmatpush.msra.mxu2 %v1568_v8  ;;  %580 = vmatpush.msra.mxu3 %v2455_v52  ;;  %v103_v51 = vmul.f32 %v2459_v50, %v58_v54  ;;  %v104_v8 = vmul.f32 %v2460_v55, %v58_v54  ;;  %v2466_v55 = vld [vmem:[#allocation37_spill] sm:$0xff] }
  0xbc   :  { %521 = vmatpush.msra.mxu0 %v1574_v56  ;;  %541 = vmatpush.msra.mxu1 %v1582_v58 }
  0xbd   :  { %561 = vmatpush.msra.mxu2 %v1584_v59  ;;  %581 = vmatpush.msra.mxu3 %v1590_v61  ;;  %v145_v52 = vadd.f32 %v2461_v57, %v103_v51  ;;  %v146_v56 = vadd.f32 %v2462_v2, %v104_v8  ;;  %v44_v59 = vld [vmem:[%s2287_s0 + $0x18] sm:$0xff]  ;;  %v2465_v8 = vld [vmem:[#allocation36_spill] sm:$0xff] }
  0xbe   :  { %62 = vperm.xlu1 %1147, %v43_v49   ;;  %v2464_v49 = vld [vmem:[#allocation34_spill] sm:$0xff]  ;;  %v147_v2 = vadd.f32 %v2465_v8, %v105_v62 }
  0xbf   :  { %v106_v50 = vmul.f32 %v2464_v49, %v58_v54  ;;  %v48_v51 = vld [vmem:[%s2287_s0 + $0x38] sm:$0xff] }
  0xc0   :  { %v2467_v49 = vld [vmem:[#allocation38_spill] sm:$0xff] }
  0xc1   :  { %v148_v63 = vadd.f32 %v2466_v55, %v106_v50 }
  0xc6   :  { %67 = vperm.xlu1 %1147, %v44_v59  }
  0xce   :  { %87 = vperm.xlu1 %1147, %v48_v51   ;;  %v2473_v51 = vld [vmem:[#allocation14_spill] sm:$0xff] }
 0x119   :  { %v319_v58 = vpop.f32.mrf.mxu0  ;;  %v339_v61 = vpop.f32.mrf.mxu1 }
 0x11a   :  { %v320_v60 = vadd.f32 %v319_v58, %v145_v52  ;;  %v340_v1 = vadd.f32 %v339_v61, %v146_v56 }
 0x11c   :  { %1161 = vtanh.f32 %v320_v60 }
 0x11d   :  { %1163 = vtanh.f32 %v340_v1 }
 0x120   :  { %v359_v57 = vpop.f32.mrf.mxu2  ;;  %v379_v0 = vpop.f32.mrf.mxu3 }
 0x121   :  { %v360_v53 = vadd.f32 %v359_v57, %v147_v2  ;;  %v380_v56 = vadd.f32 %v379_v0, %v148_v63  ;;  %v2471_v0 = vld [vmem:[#allocation12_spill] sm:$0xff] }
 0x122   :  { %v1162_v52 = vpop.eup %1161 }
 0x123   :  { %v1164_v58 = vpop.eup %1163  ;;  %1165 = vtanh.f32 %v360_v53  ;;  %v386_v59 = vmul.f32 0.5, %v1162_v52  ;;  %v2470_v53 = vld [vmem:[#allocation11_spill] sm:$0xff] }
 0x124   :  { %v388_v60 = vmul.f32 0.5, %v1164_v58  ;;  %1167 = vtanh.f32 %v380_v56  ;;  %v2474_v52 = vld [vmem:[#allocation15_spill] sm:$0xff]  ;;  %v2475_v56 = vld [vmem:[#allocation16_spill] sm:$0xff]  ;;  %v2476_v58 = vld [vmem:[#allocation17_spill] sm:$0xff] }
 0x125   :  { %v387_v1 = vadd.f32 0.5, %v386_v59  ;;  %v2477_v59 = vld [vmem:[#allocation18_spill] sm:$0xff] }
 0x126   :  { %v389_v61 = vadd.f32 0.5, %v388_v60  ;;  %v2478_v60 = vld [vmem:[#allocation19_spill] sm:$0xff] }
 0x128   :  { %v392_v7 = vmul.f32 %v389_v61, %v2467_v49  ;;  %v2472_v49 = vld [vmem:[#allocation13_spill] sm:$0xff]  ;;  %v2479_v61 = vld [vmem:[#allocation20_spill] sm:$0xff] }
 0x129   :  { %v1166_v54 = vpop.eup %1165 }
 0x12a   :  { %v393_v48 = vmul.f32 %v1166_v54, %v387_v1  ;;  %v1168_v62 = vpop.eup %1167  ;;  %v2480_v1 = vld [vmem:[#allocation21_spill] sm:$0xff]  ;;  %v2481_v54 = vld [vmem:[#allocation22_spill] sm:$0xff] }
 0x12b   :  { %v390_v57 = vmul.f32 0.5, %v1168_v62  ;;  %v2482_v62 = vld [vmem:[#allocation23_spill] sm:$0xff] }
 0x12c   :  { %v1756_v8 = vadd.f32 %v393_v48, %v392_v7  ;;  %v2468_v48 = vld [vmem:[#allocation9_spill] sm:$0xff]  ;;  %v2469_v7 = vld [vmem:[#allocation10_spill] sm:$0xff] }
 0x12d   :  { %v391_v50 = vadd.f32 0.5, %v390_v57  ;;  %v2483_v57 = vld [vmem:[#allocation27_spill] sm:$0xff] }
 0x12e   :  { %1169 = vtanh.f32 %v1756_v8 }
 0x134   :  { %v1170_v2 = vpop.eup %1169 }
 0x135   :  { %v396_v63 = vmul.f32 %v1170_v2, %v391_v50  ;;  %v2484_v50 = vld [vmem:[#allocation28_spill] sm:$0xff]  ;;  %v2485_v2 = vld [vmem:[#allocation29_spill] sm:$0xff] }
 0x137   :  { %420 = vmatmul.f32.vlgmr.msrb.gmra.mxu0 %v396_v63  ;;  %440 = vmatmul.f32.vlgmr.msrb.gmra.mxu1 %v396_v63 }
 0x138   :  { %460 = vmatmul.f32.vlgmr.msrb.gmra.mxu2 %v396_v63  ;;  %480 = vmatmul.f32.vlgmr.msrb.gmra.mxu3 %v396_v63  ;;  %v2486_v63 = vld [vmem:[#allocation32_spill] sm:$0xff] }
 0x139   :  { %608 = vmatpush.msrb.mxu0 %v1380_v3  ;;  %628 = vmatpush.msrb.mxu1 %v1382_v4 }
 0x13a   :  { %648 = vmatpush.msrb.mxu2 %v1384_v5  ;;  %668 = vmatpush.msrb.mxu3 %v1388_v6 }
 0x13b   :  { %609 = vmatpush.msrb.mxu0 %v1398_v9  ;;  %629 = vmatpush.msrb.mxu1 %v1400_v10 }
 0x13c   :  { %649 = vmatpush.msrb.mxu2 %v1402_v11  ;;  %669 = vmatpush.msrb.mxu3 %v1406_v12 }
 0x13d   :  { %610 = vmatpush.msrb.mxu0 %v1410_v13  ;;  %630 = vmatpush.msrb.mxu1 %v1412_v14 }
 0x13e   :  { %650 = vmatpush.msrb.mxu2 %v1414_v15  ;;  %670 = vmatpush.msrb.mxu3 %v1418_v16 }
 0x13f   :  { %611 = vmatpush.msrb.mxu0 %v1422_v17  ;;  %631 = vmatpush.msrb.mxu1 %v1424_v18 }
 0x140   :  { %651 = vmatpush.msrb.mxu2 %v1426_v19  ;;  %671 = vmatpush.msrb.mxu3 %v1430_v20 }
 0x141   :  { %612 = vmatpush.msrb.mxu0 %v1434_v21  ;;  %632 = vmatpush.msrb.mxu1 %v1436_v22 }
 0x142   :  { %652 = vmatpush.msrb.mxu2 %v1438_v23  ;;  %672 = vmatpush.msrb.mxu3 %v1442_v24 }
 0x143   :  { %613 = vmatpush.msrb.mxu0 %v1446_v25  ;;  %633 = vmatpush.msrb.mxu1 %v1448_v26 }
 0x144   :  { %653 = vmatpush.msrb.mxu2 %v1450_v27  ;;  %673 = vmatpush.msrb.mxu3 %v1454_v28 }
 0x145   :  { %614 = vmatpush.msrb.mxu0 %v1458_v29  ;;  %634 = vmatpush.msrb.mxu1 %v1460_v30 }
 0x146   :  { %654 = vmatpush.msrb.mxu2 %v1462_v31  ;;  %674 = vmatpush.msrb.mxu3 %v1466_v32 }
 0x147   :  { %615 = vmatpush.msrb.mxu0 %v1470_v33  ;;  %635 = vmatpush.msrb.mxu1 %v1472_v34 }
 0x148   :  { %655 = vmatpush.msrb.mxu2 %v1474_v35  ;;  %675 = vmatpush.msrb.mxu3 %v1478_v36 }
 0x149   :  { %616 = vmatpush.msrb.mxu0 %v1482_v37  ;;  %636 = vmatpush.msrb.mxu1 %v1484_v38 }
 0x14a   :  { %656 = vmatpush.msrb.mxu2 %v1486_v39  ;;  %676 = vmatpush.msrb.mxu3 %v1490_v40 }
 0x14b   :  { %617 = vmatpush.msrb.mxu0 %v1494_v41  ;;  %637 = vmatpush.msrb.mxu1 %v1496_v42 }
 0x14c   :  { %657 = vmatpush.msrb.mxu2 %v1498_v43  ;;  %677 = vmatpush.msrb.mxu3 %v1502_v44 }
 0x14d   :  { %618 = vmatpush.msrb.mxu0 %v1504_v45  ;;  %638 = vmatpush.msrb.mxu1 %v1506_v46 }
 0x14e   :  { %658 = vmatpush.msrb.mxu2 %v1510_v47  ;;  %678 = vmatpush.msrb.mxu3 %v2468_v48 }
 0x14f   :  { %619 = vmatpush.msrb.mxu0 %v2469_v7  ;;  %639 = vmatpush.msrb.mxu1 %v2470_v53 }
 0x150   :  { %659 = vmatpush.msrb.mxu2 %v2471_v0  ;;  %679 = vmatpush.msrb.mxu3 %v2472_v49 }
 0x151   :  { %620 = vmatpush.msrb.mxu0 %v2473_v51  ;;  %640 = vmatpush.msrb.mxu1 %v2474_v52 }
 0x152   :  { %660 = vmatpush.msrb.mxu2 %v2475_v56  ;;  %680 = vmatpush.msrb.mxu3 %v2476_v58  ;;  %v2487_v58 = vld [vmem:[#allocation33_spill] sm:$0xff] }
 0x153   :  { %621 = vmatpush.msrb.mxu0 %v2477_v59  ;;  %641 = vmatpush.msrb.mxu1 %v2478_v60  ;;  %v2488_v59 = vld [vmem:[#allocation35_spill] sm:$0xff]  ;;  %v63_v60 = vpop.permute.xlu1 %62 }
 0x154   :  { %661 = vmatpush.msrb.mxu2 %v2479_v61  ;;  %681 = vmatpush.msrb.mxu3 %v2480_v1  ;;  %v2489_v61 = vld [vmem:[#allocation24_spill] sm:$0xff]  ;;  %v2490_v1 = vld [vmem:[#allocation25_spill] sm:$0xff] }
 0x155   :  { %622 = vmatpush.msrb.mxu0 %v2481_v54  ;;  %642 = vmatpush.msrb.mxu1 %v2482_v62  ;;  %v107_v56 = vmul.f32 %v2489_v61, %v63_v60  ;;  %v108_v52 = vmul.f32 %v2490_v1, %v63_v60  ;;  %v2491_v54 = vld [vmem:[#allocation30_spill] sm:$0xff]  ;;  %v2492_v62 = vld [vmem:[#allocation31_spill] sm:$0xff] }
 0x156   :  { %662 = vmatpush.msrb.mxu2 %v2483_v57  ;;  %682 = vmatpush.msrb.mxu3 %v2484_v50 }
 0x157   :  { %623 = vmatpush.msrb.mxu0 %v2485_v2  ;;  %643 = vmatpush.msrb.mxu1 %v2486_v63  ;;  %v149_v51 = vadd.f32 %v2491_v54, %v107_v56  ;;  %v150_v49 = vadd.f32 %v2492_v62, %v108_v52  ;;  %v2493_v2 = vld [vmem:[#allocation26_spill] sm:$0xff] }
 0x158   :  { %663 = vmatpush.msrb.mxu2 %v2487_v58  ;;  %683 = vmatpush.msrb.mxu3 %v2488_v59  ;;  %v109_v7 = vmul.f32 %v2493_v2, %v63_v60  ;;  %v2494_v63 = vld [vmem:[#allocation34_spill] sm:$0xff]  ;;  %v2495_v59 = vld [vmem:[#allocation36_spill] sm:$0xff] }
 0x159   :  { %v110_v58 = vmul.f32 %v2494_v63, %v63_v60 }
 0x15a   :  { %v151_v48 = vadd.f32 %v2495_v59, %v109_v7 }
 0x15b   :  { %v152_v61 = vadd.f32 %v2466_v55, %v110_v58 }
 0x1b4   :  { %v421_v57 = vpop.f32.mrf.mxu0  ;;  %v441_v0 = vpop.f32.mrf.mxu1 }
 0x1b5   :  { %v422_v50 = vadd.f32 %v421_v57, %v149_v51  ;;  %v442_v53 = vadd.f32 %v441_v0, %v150_v49 }
 0x1b7   :  { %1171 = vtanh.f32 %v422_v50 }
 0x1b8   :  { %1173 = vtanh.f32 %v442_v53 }
 0x1bb   :  { %v461_v47 = vpop.f32.mrf.mxu2  ;;  %v481_v1 = vpop.f32.mrf.mxu3 }
 0x1bc   :  { %v462_v46 = vadd.f32 %v461_v47, %v151_v48  ;;  %v482_v54 = vadd.f32 %v481_v1, %v152_v61 }
 0x1bd   :  { %v1172_v56 = vpop.eup %1171 }
 0x1be   :  { %v1174_v52 = vpop.eup %1173  ;;  %1175 = vtanh.f32 %v462_v46  ;;  %v488_v62 = vmul.f32 0.5, %v1172_v56 }
 0x1bf   :  { %v490_v51 = vmul.f32 0.5, %v1174_v52  ;;  %1177 = vtanh.f32 %v482_v54 }
 0x1c0   :  { %v489_v49 = vadd.f32 0.5, %v488_v62 }
 0x1c1   :  { %v491_v0 = vadd.f32 0.5, %v490_v51 }
 0x1c3   :  { %v494_v60 = vmul.f32 %v491_v0, %v1756_v8 }
 0x1c4   :  { %v1176_v57 = vpop.eup %1175 }
 0x1c5   :  { %v495_v53 = vmul.f32 %v1176_v57, %v489_v49  ;;  %v1178_v50 = vpop.eup %1177 }
 0x1c6   :  { %v492_v58 = vmul.f32 0.5, %v1178_v50 }
 0x1c7   :  { %v1832_v7 = vadd.f32 %v495_v53, %v494_v60 }
 0x1c8   :  { %v493_v47 = vadd.f32 0.5, %v492_v58 }
 0x1c9   :  { %1179 = vtanh.f32 %v1832_v7 }
 0x1cf   :  { %v1180_v48 = vpop.eup %1179 }
 0x1d0   :  { %v498_v61 = vmul.f32 %v1180_v48, %v493_v47 }
 0x1d2   :  { %522 = vmatmul.f32.vlgmr.msra.gmra.mxu0 %v498_v61  ;;  %542 = vmatmul.f32.vlgmr.msra.gmra.mxu1 %v498_v61 }
 0x1d3   :  { %562 = vmatmul.f32.vlgmr.msra.gmra.mxu2 %v498_v61  ;;  %582 = vmatmul.f32.vlgmr.msra.gmra.mxu3 %v498_v61 }
 0x1d4   :  { %710 = vmatpush.msra.mxu0 %v1380_v3  ;;  %730 = vmatpush.msra.mxu1 %v1382_v4  ;;  %v2496_v3 = vld [vmem:[#allocation7_spill] sm:$0xff]  ;;  %v2497_v4 = vld [vmem:[#allocation8_spill] sm:$0xff] }
 0x1d5   :  { %750 = vmatpush.msra.mxu2 %v1384_v5  ;;  %770 = vmatpush.msra.mxu3 %v1388_v6  ;;  %v2498_v5 = vld [vmem:[#allocation9_spill] sm:$0xff]  ;;  %v2499_v6 = vld [vmem:[#allocation10_spill] sm:$0xff] }
 0x1d6   :  { %711 = vmatpush.msra.mxu0 %v1398_v9  ;;  %731 = vmatpush.msra.mxu1 %v1400_v10  ;;  %v2500_v9 = vld [vmem:[#allocation11_spill] sm:$0xff]  ;;  %v2501_v10 = vld [vmem:[#allocation12_spill] sm:$0xff] }
 0x1d7   :  { %751 = vmatpush.msra.mxu2 %v1402_v11  ;;  %771 = vmatpush.msra.mxu3 %v1406_v12  ;;  %v2502_v11 = vld [vmem:[#allocation13_spill] sm:$0xff]  ;;  %v2503_v12 = vld [vmem:[#allocation14_spill] sm:$0xff] }
 0x1d8   :  { %712 = vmatpush.msra.mxu0 %v1410_v13  ;;  %732 = vmatpush.msra.mxu1 %v1412_v14  ;;  %v2504_v13 = vld [vmem:[#allocation15_spill] sm:$0xff]  ;;  %v2505_v14 = vld [vmem:[#allocation16_spill] sm:$0xff] }
 0x1d9   :  { %752 = vmatpush.msra.mxu2 %v1414_v15  ;;  %772 = vmatpush.msra.mxu3 %v1418_v16  ;;  %v2506_v15 = vld [vmem:[#allocation17_spill] sm:$0xff]  ;;  %v2507_v16 = vld [vmem:[#allocation18_spill] sm:$0xff] }
 0x1da   :  { %713 = vmatpush.msra.mxu0 %v1422_v17  ;;  %733 = vmatpush.msra.mxu1 %v1424_v18  ;;  %v2508_v17 = vld [vmem:[#allocation19_spill] sm:$0xff]  ;;  %v2509_v18 = vld [vmem:[#allocation20_spill] sm:$0xff] }
 0x1db   :  { %753 = vmatpush.msra.mxu2 %v1426_v19  ;;  %773 = vmatpush.msra.mxu3 %v1430_v20  ;;  %v2510_v19 = vld [vmem:[#allocation21_spill] sm:$0xff]  ;;  %v2511_v20 = vld [vmem:[#allocation22_spill] sm:$0xff] }
 0x1dc   :  { %714 = vmatpush.msra.mxu0 %v1434_v21  ;;  %734 = vmatpush.msra.mxu1 %v1436_v22  ;;  %v2512_v21 = vld [vmem:[#allocation23_spill] sm:$0xff] }
 0x1dd   :  { %754 = vmatpush.msra.mxu2 %v1438_v23  ;;  %774 = vmatpush.msra.mxu3 %v1442_v24  ;;  %v2513_v22 = vld [vmem:[#allocation27_spill] sm:$0xff]  ;;  %v2514_v23 = vld [vmem:[#allocation28_spill] sm:$0xff]  ;;  %v2515_v24 = vld [vmem:[#allocation29_spill] sm:$0xff] }
 0x1de   :  { %715 = vmatpush.msra.mxu0 %v1446_v25  ;;  %735 = vmatpush.msra.mxu1 %v1448_v26  ;;  %v2516_v25 = vld [vmem:[#allocation32_spill] sm:$0xff]  ;;  %v2517_v26 = vld [vmem:[#allocation33_spill] sm:$0xff] }
 0x1df   :  { %755 = vmatpush.msra.mxu2 %v1450_v27  ;;  %775 = vmatpush.msra.mxu3 %v1454_v28  ;;  %v2518_v27 = vld [vmem:[#allocation35_spill] sm:$0xff]  ;;  %v68_v28 = vpop.permute.xlu1 %67 }
 0x1e0   :  { %716 = vmatpush.msra.mxu0 %v1458_v29  ;;  %736 = vmatpush.msra.mxu1 %v1460_v30  ;;  %v2519_v29 = vld [vmem:[#allocation24_spill] sm:$0xff] }
 0x1e1   :  { %756 = vmatpush.msra.mxu2 %v1462_v31  ;;  %776 = vmatpush.msra.mxu3 %v1466_v32  ;;  %v111_v30 = vmul.f32 %v2519_v29, %v68_v28  ;;  %v2520_v31 = vld [vmem:[#allocation25_spill] sm:$0xff] }
 0x1e2   :  { %717 = vmatpush.msra.mxu0 %v1470_v33  ;;  %737 = vmatpush.msra.mxu1 %v1472_v34  ;;  %v112_v32 = vmul.f32 %v2520_v31, %v68_v28  ;;  %v2521_v33 = vld [vmem:[#allocation30_spill] sm:$0xff] }
 0x1e3   :  { %757 = vmatpush.msra.mxu2 %v1474_v35  ;;  %777 = vmatpush.msra.mxu3 %v1478_v36  ;;  %v153_v34 = vadd.f32 %v2521_v33, %v111_v30  ;;  %v2522_v35 = vld [vmem:[#allocation31_spill] sm:$0xff]  ;;  %v1968_v30 = vld [vmem:[#allocation4 + $0x168] sm:$0xff] }
 0x1e4   :  { %718 = vmatpush.msra.mxu0 %v1482_v37  ;;  %738 = vmatpush.msra.mxu1 %v1484_v38  ;;  %v154_v36 = vadd.f32 %v2522_v35, %v112_v32  ;;  %v45_v37 = vld [vmem:[%s2287_s0 + $0x20] sm:$0xff]  ;;  %v1971_v32 = vld [vmem:[#allocation4 + $0x170] sm:$0xff] }
 0x1e5   :  { %758 = vmatpush.msra.mxu2 %v1486_v39  ;;  %778 = vmatpush.msra.mxu3 %v1490_v40 }
 0x1e6   :  { %719 = vmatpush.msra.mxu0 %v1494_v41  ;;  %739 = vmatpush.msra.mxu1 %v1496_v42  ;;  %v113_v42 = vmul.f32 %v2493_v2, %v68_v28 }
 0x1e7   :  { %759 = vmatpush.msra.mxu2 %v1498_v43  ;;  %779 = vmatpush.msra.mxu3 %v1502_v44  ;;  %v114_v43 = vmul.f32 %v2494_v63, %v68_v28  ;;  %v46_v44 = vld [vmem:[%s2287_s0 + $0x28] sm:$0xff] }
 0x1e8   :  { %720 = vmatpush.msra.mxu0 %v1504_v45  ;;  %740 = vmatpush.msra.mxu1 %v2496_v3  ;;  %v155_v45 = vadd.f32 %v2495_v59, %v113_v42  ;;  %v1965_v28 = vld [vmem:[#allocation4 + $0x160] sm:$0xff]  ;;  %v1995_v42 = vld [vmem:[#allocation4 + $0x130] sm:$0xff] }
 0x1e9   :  { %760 = vmatpush.msra.mxu2 %v2497_v4  ;;  %780 = vmatpush.msra.mxu3 %v2498_v5  ;;  %v156_v8 = vadd.f32 %v2466_v55, %v114_v43  ;;  %v1917_v5 = vld [vmem:[#allocation4 + $0x1e0] sm:$0xff]  ;;  %v1998_v43 = vld [vmem:[#allocation4 + $0x138] sm:$0xff] }
 0x1ea   :  { %721 = vmatpush.msra.mxu0 %v2499_v6  ;;  %741 = vmatpush.msra.mxu1 %v2500_v9  ;;  %v1920_v6 = vld [vmem:[#allocation4 + $0x1e8] sm:$0xff]  ;;  %v1926_v9 = vld [vmem:[#allocation4 + $0x1f8] sm:$0xff] }
 0x1eb   :  { %761 = vmatpush.msra.mxu2 %v2501_v10  ;;  %781 = vmatpush.msra.mxu3 %v2502_v11  ;;  %v1929_v10 = vld [vmem:[#allocation4 + $0x1c0] sm:$0xff]  ;;  %v1932_v11 = vld [vmem:[#allocation4 + $0x1c8] sm:$0xff] }
 0x1ec   :  { %722 = vmatpush.msra.mxu0 %v2503_v12  ;;  %742 = vmatpush.msra.mxu1 %v2504_v13  ;;  %v1935_v12 = vld [vmem:[#allocation4 + $0x1d0] sm:$0xff]  ;;  %v1938_v13 = vld [vmem:[#allocation4 + $0x1d8] sm:$0xff] }
 0x1ed   :  { %762 = vmatpush.msra.mxu2 %v2505_v14  ;;  %782 = vmatpush.msra.mxu3 %v2506_v15  ;;  %v1941_v14 = vld [vmem:[#allocation4 + $0x1a0] sm:$0xff]  ;;  %v1944_v15 = vld [vmem:[#allocation4 + $0x1a8] sm:$0xff] }
 0x1ee   :  { %723 = vmatpush.msra.mxu0 %v2507_v16  ;;  %743 = vmatpush.msra.mxu1 %v2508_v17  ;;  %v1947_v16 = vld [vmem:[#allocation4 + $0x1b0] sm:$0xff]  ;;  %v1950_v17 = vld [vmem:[#allocation4 + $0x1b8] sm:$0xff] }
 0x1ef   :  { %763 = vmatpush.msra.mxu2 %v2509_v18  ;;  %783 = vmatpush.msra.mxu3 %v2510_v19  ;;  %v1953_v18 = vld [vmem:[#allocation4 + $0x180] sm:$0xff]  ;;  %v1956_v19 = vld [vmem:[#allocation4 + $0x188] sm:$0xff] }
 0x1f0   :  { %724 = vmatpush.msra.mxu0 %v2511_v20  ;;  %744 = vmatpush.msra.mxu1 %v2512_v21  ;;  %v1959_v20 = vld [vmem:[#allocation4 + $0x190] sm:$0xff]  ;;  %v1962_v21 = vld [vmem:[#allocation4 + $0x198] sm:$0xff] }
 0x1f1   :  { %764 = vmatpush.msra.mxu2 %v2513_v22  ;;  %784 = vmatpush.msra.mxu3 %v2514_v23 }
 0x1f2   :  { %725 = vmatpush.msra.mxu0 %v2515_v24  ;;  %745 = vmatpush.msra.mxu1 %v2516_v25 }
 0x1f3   :  { %765 = vmatpush.msra.mxu2 %v2517_v26  ;;  %785 = vmatpush.msra.mxu3 %v2518_v27 }
 0x1f4   :  { %72 = vperm.xlu2 %1148, %v45_v37   ;;  %v1980_v37 = vld [vmem:[#allocation4 + $0x148] sm:$0xff] }
 0x1fc   :  { %77 = vperm.xlu2 %1148, %v46_v44   ;;  %v2001_v44 = vld [vmem:[#allocation4 + $0x100] sm:$0xff] }
 0x24f   :  { %v523_v38 = vpop.f32.mrf.mxu0  ;;  %v543_v39 = vpop.f32.mrf.mxu1 }
 0x250   :  { %v524_v40 = vadd.f32 %v523_v38, %v153_v34  ;;  %v544_v41 = vadd.f32 %v543_v39, %v154_v36  ;;  %v1974_v34 = vld [vmem:[#allocation4 + $0x178] sm:$0xff]  ;;  %v1977_v36 = vld [vmem:[#allocation4 + $0x140] sm:$0xff]  ;;  %v1983_v38 = vld [vmem:[#allocation4 + $0x150] sm:$0xff] }
 0x251   :  { %v1986_v39 = vld [vmem:[#allocation4 + $0x158] sm:$0xff] }
 0x252   :  { %1181 = vtanh.f32 %v524_v40  ;;  %v1989_v40 = vld [vmem:[#allocation4 + $0x120] sm:$0xff] }
 0x253   :  { %1183 = vtanh.f32 %v544_v41  ;;  %v1992_v41 = vld [vmem:[#allocation4 + $0x128] sm:$0xff] }
 0x256   :  { %v563_v46 = vpop.f32.mrf.mxu2  ;;  %v583_v1 = vpop.f32.mrf.mxu3 }
 0x257   :  { %v564_v54 = vadd.f32 %v563_v46, %v155_v45  ;;  %v584_v56 = vadd.f32 %v583_v1, %v156_v8  ;;  %v2004_v45 = vld [vmem:[#allocation4 + $0x108] sm:$0xff]  ;;  %v2007_v46 = vld [vmem:[#allocation4 + $0x110] sm:$0xff]  ;;  %v2010_v8 = vld [vmem:[#allocation4 + $0x118] sm:$0xff] }
 0x258   :  { %v1182_v62 = vpop.eup %1181  ;;  %v2013_v1 = vld [vmem:[#allocation4 + $0xe0] sm:$0xff] }
 0x259   :  { %v1184_v52 = vpop.eup %1183  ;;  %1185 = vtanh.f32 %v564_v54  ;;  %v590_v51 = vmul.f32 0.5, %v1182_v62  ;;  %v2016_v54 = vld [vmem:[#allocation4 + $0xe8] sm:$0xff]  ;;  %v2019_v62 = vld [vmem:[#allocation4 + $0xf0] sm:$0xff] }
 0x25a   :  { %v592_v0 = vmul.f32 0.5, %v1184_v52  ;;  %1187 = vtanh.f32 %v584_v56  ;;  %v2022_v56 = vld [vmem:[#allocation4 + $0xf8] sm:$0xff]  ;;  %v2025_v52 = vld [vmem:[#allocation4 + $0xc0] sm:$0xff] }
 0x25b   :  { %v591_v57 = vadd.f32 0.5, %v590_v51  ;;  %v2028_v51 = vld [vmem:[#allocation4 + $0xc8] sm:$0xff] }
 0x25c   :  { %v593_v49 = vadd.f32 0.5, %v592_v0  ;;  %v2031_v0 = vld [vmem:[#allocation4 + $0xd0] sm:$0xff] }
 0x25e   :  { %v596_v53 = vmul.f32 %v593_v49, %v1832_v7  ;;  %v1923_v7 = vld [vmem:[#allocation4 + $0x1f0] sm:$0xff]  ;;  %v2034_v49 = vld [vmem:[#allocation4 + $0xd8] sm:$0xff] }
 0x25f   :  { %v1186_v60 = vpop.eup %1185 }
 0x260   :  { %v597_v50 = vmul.f32 %v1186_v60, %v591_v57  ;;  %v1188_v58 = vpop.eup %1187  ;;  %v2037_v57 = vld [vmem:[#allocation4 + $0xa0] sm:$0xff]  ;;  %v2040_v60 = vld [vmem:[#allocation4 + $0xa8] sm:$0xff] }
 0x261   :  { %v594_v48 = vmul.f32 0.5, %v1188_v58  ;;  %2523 = vst [vmem:[#allocation37_spill] sm:$0xff] %v2040_v60  ;;  %v2049_v58 = vld [vmem:[#allocation4 + $0x80] sm:$0xff] }
 0x262   :  { %v1914_v47 = vadd.f32 %v597_v50, %v596_v53  ;;  %v2043_v53 = vld [vmem:[#allocation4 + $0xb0] sm:$0xff]  ;;  %v2046_v50 = vld [vmem:[#allocation4 + $0xb8] sm:$0xff]  ;;  %2526 = vst [vmem:[#allocation34_spill] sm:$0xff] %v2049_v58 }
 0x263   :  { %v595_v61 = vadd.f32 0.5, %v594_v48  ;;  %2524 = vst [vmem:[#allocation38_spill] sm:$0xff] %v2043_v53  ;;  %v2052_v48 = vld [vmem:[#allocation4 + $0x88] sm:$0xff] }
 0x264   :  { %1189 = vtanh.f32 %v1914_v47  ;;  %2525 = vst [vmem:[#allocation26_spill] sm:$0xff] %v2046_v50 }
 0x265   :  { %2527 = vst [vmem:[#allocation36_spill] sm:$0xff] %v2052_v48 }
 0x26a   :  { %v1190_v3 = vpop.eup %1189 }
 0x26b   :  { %v600_v4 = vmul.f32 %v1190_v3, %v595_v61  ;;  %v2055_v61 = vld [vmem:[#allocation4 + $0x90] sm:$0xff]  ;;  %v2058_v3 = vld [vmem:[#allocation4 + $0x98] sm:$0xff] }
 0x26c   :  { %2528 = vst [vmem:[#allocation7_spill] sm:$0xff] %v2055_v61 }
 0x26d   :  { %624 = vmatmul.f32.vlgmr.msrb.gmra.mxu0 %v600_v4  ;;  %644 = vmatmul.f32.vlgmr.msrb.gmra.mxu1 %v600_v4  ;;  %2529 = vst [vmem:[#allocation8_spill] sm:$0xff] %v2058_v3 }
 0x26e   :  { %664 = vmatmul.f32.vlgmr.msrb.gmra.mxu2 %v600_v4  ;;  %684 = vmatmul.f32.vlgmr.msrb.gmra.mxu3 %v600_v4  ;;  %v2061_v4 = vld [vmem:[#allocation4 + $0x60] sm:$0xff] }
 0x26f   :  { %812 = vmatpush.msrb.mxu0 %v1917_v5  ;;  %832 = vmatpush.msrb.mxu1 %v1920_v6  ;;  %2530 = vst [vmem:[#allocation9_spill] sm:$0xff] %v2061_v4 }
 0x270   :  { %852 = vmatpush.msrb.mxu2 %v1923_v7  ;;  %872 = vmatpush.msrb.mxu3 %v1926_v9 }
 0x271   :  { %813 = vmatpush.msrb.mxu0 %v1929_v10  ;;  %833 = vmatpush.msrb.mxu1 %v1932_v11 }
 0x272   :  { %853 = vmatpush.msrb.mxu2 %v1935_v12  ;;  %873 = vmatpush.msrb.mxu3 %v1938_v13 }
 0x273   :  { %814 = vmatpush.msrb.mxu0 %v1941_v14  ;;  %834 = vmatpush.msrb.mxu1 %v1944_v15 }
 0x274   :  { %854 = vmatpush.msrb.mxu2 %v1947_v16  ;;  %874 = vmatpush.msrb.mxu3 %v1950_v17 }
 0x275   :  { %815 = vmatpush.msrb.mxu0 %v1953_v18  ;;  %835 = vmatpush.msrb.mxu1 %v1956_v19 }
 0x276   :  { %855 = vmatpush.msrb.mxu2 %v1959_v20  ;;  %875 = vmatpush.msrb.mxu3 %v1962_v21 }
 0x277   :  { %816 = vmatpush.msrb.mxu0 %v1965_v28  ;;  %836 = vmatpush.msrb.mxu1 %v1968_v30 }
 0x278   :  { %856 = vmatpush.msrb.mxu2 %v1971_v32  ;;  %876 = vmatpush.msrb.mxu3 %v1974_v34 }
 0x279   :  { %817 = vmatpush.msrb.mxu0 %v1977_v36  ;;  %837 = vmatpush.msrb.mxu1 %v1980_v37 }
 0x27a   :  { %857 = vmatpush.msrb.mxu2 %v1983_v38  ;;  %877 = vmatpush.msrb.mxu3 %v1986_v39 }
 0x27b   :  { %818 = vmatpush.msrb.mxu0 %v1989_v40  ;;  %838 = vmatpush.msrb.mxu1 %v1992_v41 }
 0x27c   :  { %858 = vmatpush.msrb.mxu2 %v1995_v42  ;;  %878 = vmatpush.msrb.mxu3 %v1998_v43 }
 0x27d   :  { %819 = vmatpush.msrb.mxu0 %v2001_v44  ;;  %839 = vmatpush.msrb.mxu1 %v2004_v45 }
 0x27e   :  { %859 = vmatpush.msrb.mxu2 %v2007_v46  ;;  %879 = vmatpush.msrb.mxu3 %v2010_v8 }
 0x27f   :  { %820 = vmatpush.msrb.mxu0 %v2013_v1  ;;  %840 = vmatpush.msrb.mxu1 %v2016_v54 }
 0x280   :  { %860 = vmatpush.msrb.mxu2 %v2019_v62  ;;  %880 = vmatpush.msrb.mxu3 %v2022_v56 }
 0x281   :  { %821 = vmatpush.msrb.mxu0 %v2025_v52  ;;  %841 = vmatpush.msrb.mxu1 %v2028_v51 }
 0x282   :  { %861 = vmatpush.msrb.mxu2 %v2031_v0  ;;  %881 = vmatpush.msrb.mxu3 %v2034_v49 }
 0x283   :  { %822 = vmatpush.msrb.mxu0 %v2037_v57  ;;  %842 = vmatpush.msrb.mxu1 %v2040_v60 }
 0x284   :  { %862 = vmatpush.msrb.mxu2 %v2043_v53  ;;  %882 = vmatpush.msrb.mxu3 %v2046_v50  ;;  %v2064_v50 = vld [vmem:[#allocation4 + $0x68] sm:$0xff] }
 0x285   :  { %823 = vmatpush.msrb.mxu0 %v2049_v58  ;;  %843 = vmatpush.msrb.mxu1 %v2052_v48  ;;  %2531 = vst [vmem:[#allocation10_spill] sm:$0xff] %v2064_v50  ;;  %v2067_v58 = vld [vmem:[#allocation4 + $0x70] sm:$0xff]  ;;  %v2070_v48 = vld [vmem:[#allocation4 + $0x78] sm:$0xff] }
 0x286   :  { %863 = vmatpush.msrb.mxu2 %v2055_v61  ;;  %883 = vmatpush.msrb.mxu3 %v2058_v3  ;;  %2532 = vst [vmem:[#allocation11_spill] sm:$0xff] %v2067_v58  ;;  %v2073_v61 = vld [vmem:[#allocation4 + $0x40] sm:$0xff]  ;;  %v2076_v3 = vld [vmem:[#allocation4 + $0x48] sm:$0xff] }
 0x287   :  { %824 = vmatpush.msrb.mxu0 %v2061_v4  ;;  %844 = vmatpush.msrb.mxu1 %v2064_v50  ;;  %2533 = vst [vmem:[#allocation12_spill] sm:$0xff] %v2070_v48  ;;  %v2079_v4 = vld [vmem:[#allocation4 + $0x50] sm:$0xff]  ;;  %v2082_v50 = vld [vmem:[#allocation4 + $0x58] sm:$0xff] }
 0x288   :  { %864 = vmatpush.msrb.mxu2 %v2067_v58  ;;  %884 = vmatpush.msrb.mxu3 %v2070_v48  ;;  %2534 = vst [vmem:[#allocation13_spill] sm:$0xff] %v2073_v61  ;;  %v2085_v58 = vld [vmem:[#allocation4 + $0x20] sm:$0xff]  ;;  %v2088_v48 = vld [vmem:[#allocation4 + $0x28] sm:$0xff] }
 0x289   :  { %825 = vmatpush.msrb.mxu0 %v2073_v61  ;;  %2535 = vst [vmem:[#allocation14_spill] sm:$0xff] %v2076_v3  ;;  %845 = vmatpush.msrb.mxu1 %v2076_v3 }
 0x28a   :  { %2536 = vst [vmem:[#allocation15_spill] sm:$0xff] %v2079_v4  ;;  %865 = vmatpush.msrb.mxu2 %v2079_v4  ;;  %885 = vmatpush.msrb.mxu3 %v2082_v50 }
 0x28b   :  { %2537 = vst [vmem:[#allocation16_spill] sm:$0xff] %v2082_v50  ;;  %826 = vmatpush.msrb.mxu0 %v2085_v58  ;;  %846 = vmatpush.msrb.mxu1 %v2088_v48  ;;  %v73_v50 = vpop.permute.xlu2 %72 }
 0x28c   :  { %2538 = vst [vmem:[#allocation17_spill] sm:$0xff] %v2085_v58  ;;  %866 = vmatpush.msrb.mxu2 %v2513_v22  ;;  %886 = vmatpush.msrb.mxu3 %v2514_v23  ;;  %v115_v4 = vmul.f32 %v2519_v29, %v73_v50  ;;  %v116_v58 = vmul.f32 %v2520_v31, %v73_v50 }
 0x28d   :  { %2539 = vst [vmem:[#allocation18_spill] sm:$0xff] %v2088_v48  ;;  %827 = vmatpush.msrb.mxu0 %v2515_v24  ;;  %847 = vmatpush.msrb.mxu1 %v2516_v25  ;;  %v117_v24 = vmul.f32 %v2493_v2, %v73_v50  ;;  %v118_v25 = vmul.f32 %v2494_v63, %v73_v50 }
 0x28e   :  { %867 = vmatpush.msrb.mxu2 %v2517_v26  ;;  %887 = vmatpush.msrb.mxu3 %v2518_v27  ;;  %v157_v3 = vadd.f32 %v2521_v33, %v115_v4  ;;  %v158_v48 = vadd.f32 %v2522_v35, %v116_v58 }
 0x28f   :  { %v159_v26 = vadd.f32 %v2495_v59, %v117_v24  ;;  %v160_v29 = vadd.f32 %v2466_v55, %v118_v25 }
 0x2ea   :  { %v625_v22 = vpop.f32.mrf.mxu0  ;;  %v645_v61 = vpop.f32.mrf.mxu1 }
 0x2eb   :  { %v626_v23 = vadd.f32 %v625_v22, %v157_v3  ;;  %v646_v53 = vadd.f32 %v645_v61, %v158_v48 }
 0x2ed   :  { %1191 = vtanh.f32 %v626_v23 }
 0x2ee   :  { %1193 = vtanh.f32 %v646_v53 }
 0x2f1   :  { %v665_v27 = vpop.f32.mrf.mxu2  ;;  %v685_v31 = vpop.f32.mrf.mxu3 }
 0x2f2   :  { %v666_v60 = vadd.f32 %v665_v27, %v159_v26  ;;  %v686_v33 = vadd.f32 %v685_v31, %v160_v29  ;;  %v2540_v31 = vld [vmem:[#allocation37_spill] sm:$0xff] }
 0x2f3   :  { %v1192_v4 = vpop.eup %1191 }
 0x2f4   :  { %v1194_v58 = vpop.eup %1193  ;;  %1195 = vtanh.f32 %v666_v60  ;;  %v692_v35 = vmul.f32 0.5, %v1192_v4  ;;  %v2544_v60 = vld [vmem:[#allocation36_spill] sm:$0xff]  ;;  %v2545_v4 = vld [vmem:[#allocation7_spill] sm:$0xff] }
 0x2f5   :  { %v694_v3 = vmul.f32 0.5, %v1194_v58  ;;  %1197 = vtanh.f32 %v686_v33  ;;  %v2541_v33 = vld [vmem:[#allocation38_spill] sm:$0xff]  ;;  %v2546_v58 = vld [vmem:[#allocation8_spill] sm:$0xff] }
 0x2f6   :  { %v693_v61 = vadd.f32 0.5, %v692_v35  ;;  %v2542_v35 = vld [vmem:[#allocation26_spill] sm:$0xff] }
 0x2f7   :  { %v695_v48 = vadd.f32 0.5, %v694_v3  ;;  %v2547_v3 = vld [vmem:[#allocation9_spill] sm:$0xff] }
 0x2f9   :  { %v698_v50 = vmul.f32 %v695_v48, %v1914_v47  ;;  %v2543_v47 = vld [vmem:[#allocation34_spill] sm:$0xff] }
 0x2fa   :  { %v1196_v22 = vpop.eup %1195  ;;  %v2548_v48 = vld [vmem:[#allocation10_spill] sm:$0xff] }
 0x2fb   :  { %v699_v53 = vmul.f32 %v1196_v22, %v693_v61  ;;  %v1198_v23 = vpop.eup %1197  ;;  %v2549_v61 = vld [vmem:[#allocation11_spill] sm:$0xff]  ;;  %v2550_v22 = vld [vmem:[#allocation12_spill] sm:$0xff] }
 0x2fc   :  { %v696_v25 = vmul.f32 0.5, %v1198_v23  ;;  %v2553_v23 = vld [vmem:[#allocation15_spill] sm:$0xff] }
 0x2fd   :  { %v2106_v24 = vadd.f32 %v699_v53, %v698_v50  ;;  %v2551_v50 = vld [vmem:[#allocation13_spill] sm:$0xff]  ;;  %v2552_v53 = vld [vmem:[#allocation14_spill] sm:$0xff] }
 0x2fe   :  { %v697_v26 = vadd.f32 0.5, %v696_v25  ;;  %v2554_v25 = vld [vmem:[#allocation16_spill] sm:$0xff] }
 0x2ff   :  { %1199 = vtanh.f32 %v2106_v24 }
 0x305   :  { %v1200_v27 = vpop.eup %1199 }
 0x306   :  { %v702_v29 = vmul.f32 %v1200_v27, %v697_v26  ;;  %v2555_v26 = vld [vmem:[#allocation17_spill] sm:$0xff]  ;;  %v2556_v27 = vld [vmem:[#allocation18_spill] sm:$0xff] }
 0x308   :  { %726 = vmatmul.f32.vlgmr.msra.gmra.mxu0 %v702_v29  ;;  %746 = vmatmul.f32.vlgmr.msra.gmra.mxu1 %v702_v29 }
 0x309   :  { %766 = vmatmul.f32.vlgmr.msra.gmra.mxu2 %v702_v29  ;;  %786 = vmatmul.f32.vlgmr.msra.gmra.mxu3 %v702_v29  ;;  %v2167_v29 = vld [vmem:[#allocation4 + $0x30] sm:$0xff] }
 0x30a   :  { %914 = vmatpush.msra.mxu0 %v1917_v5  ;;  %934 = vmatpush.msra.mxu1 %v1920_v6  ;;  %2557 = vst [vmem:[#allocation19_spill] sm:$0xff] %v2167_v29 }
 0x30b   :  { %954 = vmatpush.msra.mxu2 %v1923_v7  ;;  %974 = vmatpush.msra.mxu3 %v1926_v9 }
 0x30c   :  { %915 = vmatpush.msra.mxu0 %v1929_v10  ;;  %935 = vmatpush.msra.mxu1 %v1932_v11 }
 0x30d   :  { %955 = vmatpush.msra.mxu2 %v1935_v12  ;;  %975 = vmatpush.msra.mxu3 %v1938_v13 }
 0x30e   :  { %916 = vmatpush.msra.mxu0 %v1941_v14  ;;  %936 = vmatpush.msra.mxu1 %v1944_v15 }
 0x30f   :  { %956 = vmatpush.msra.mxu2 %v1947_v16  ;;  %976 = vmatpush.msra.mxu3 %v1950_v17 }
 0x310   :  { %917 = vmatpush.msra.mxu0 %v1953_v18  ;;  %937 = vmatpush.msra.mxu1 %v1956_v19 }
 0x311   :  { %957 = vmatpush.msra.mxu2 %v1959_v20  ;;  %977 = vmatpush.msra.mxu3 %v1962_v21 }
 0x312   :  { %918 = vmatpush.msra.mxu0 %v1965_v28  ;;  %938 = vmatpush.msra.mxu1 %v1968_v30 }
 0x313   :  { %958 = vmatpush.msra.mxu2 %v1971_v32  ;;  %978 = vmatpush.msra.mxu3 %v1974_v34 }
 0x314   :  { %919 = vmatpush.msra.mxu0 %v1977_v36  ;;  %939 = vmatpush.msra.mxu1 %v1980_v37 }
 0x315   :  { %959 = vmatpush.msra.mxu2 %v1983_v38  ;;  %979 = vmatpush.msra.mxu3 %v1986_v39 }
 0x316   :  { %920 = vmatpush.msra.mxu0 %v1989_v40  ;;  %940 = vmatpush.msra.mxu1 %v1992_v41 }
 0x317   :  { %960 = vmatpush.msra.mxu2 %v1995_v42  ;;  %980 = vmatpush.msra.mxu3 %v1998_v43 }
 0x318   :  { %921 = vmatpush.msra.mxu0 %v2001_v44  ;;  %941 = vmatpush.msra.mxu1 %v2004_v45 }
 0x319   :  { %961 = vmatpush.msra.mxu2 %v2007_v46  ;;  %981 = vmatpush.msra.mxu3 %v2010_v8 }
 0x31a   :  { %922 = vmatpush.msra.mxu0 %v2013_v1  ;;  %942 = vmatpush.msra.mxu1 %v2016_v54 }
 0x31b   :  { %962 = vmatpush.msra.mxu2 %v2019_v62  ;;  %982 = vmatpush.msra.mxu3 %v2022_v56 }
 0x31c   :  { %923 = vmatpush.msra.mxu0 %v2025_v52  ;;  %943 = vmatpush.msra.mxu1 %v2028_v51 }
 0x31d   :  { %963 = vmatpush.msra.mxu2 %v2031_v0  ;;  %983 = vmatpush.msra.mxu3 %v2034_v49 }
 0x31e   :  { %924 = vmatpush.msra.mxu0 %v2037_v57  ;;  %944 = vmatpush.msra.mxu1 %v2540_v31 }
 0x31f   :  { %964 = vmatpush.msra.mxu2 %v2541_v33  ;;  %984 = vmatpush.msra.mxu3 %v2542_v35 }
 0x320   :  { %925 = vmatpush.msra.mxu0 %v2543_v47  ;;  %945 = vmatpush.msra.mxu1 %v2544_v60 }
 0x321   :  { %965 = vmatpush.msra.mxu2 %v2545_v4  ;;  %985 = vmatpush.msra.mxu3 %v2546_v58 }
 0x322   :  { %926 = vmatpush.msra.mxu0 %v2547_v3  ;;  %946 = vmatpush.msra.mxu1 %v2548_v48  ;;  %v2170_v48 = vld [vmem:[#allocation4 + $0x38] sm:$0xff] }
 0x323   :  { %966 = vmatpush.msra.mxu2 %v2549_v61  ;;  %986 = vmatpush.msra.mxu3 %v2550_v22  ;;  %2558 = vst [vmem:[#allocation20_spill] sm:$0xff] %v2170_v48  ;;  %v2173_v22 = vld [vmem:[#allocation4] sm:$0xff]  ;;  %v2565_v61 = vld [vmem:[#allocation30_spill] sm:$0xff] }
 0x324   :  { %927 = vmatpush.msra.mxu0 %v2551_v50  ;;  %947 = vmatpush.msra.mxu1 %v2552_v53  ;;  %2559 = vst [vmem:[#allocation21_spill] sm:$0xff] %v2173_v22  ;;  %v2176_v53 = vld [vmem:[#allocation4 + $0x8] sm:$0xff] }
 0x325   :  { %967 = vmatpush.msra.mxu2 %v2553_v23  ;;  %987 = vmatpush.msra.mxu3 %v2554_v25  ;;  %2560 = vst [vmem:[#allocation22_spill] sm:$0xff] %v2176_v53  ;;  %v2179_v25 = vld [vmem:[#allocation4 + $0x10] sm:$0xff] }
 0x326   :  { %928 = vmatpush.msra.mxu0 %v2555_v26  ;;  %948 = vmatpush.msra.mxu1 %v2556_v27  ;;  %2561 = vst [vmem:[#allocation23_spill] sm:$0xff] %v2179_v25  ;;  %v2182_v27 = vld [vmem:[#allocation4 + $0x18] sm:$0xff]  ;;  %v2563_v26 = vld [vmem:[#allocation24_spill] sm:$0xff] }
 0x327   :  { %968 = vmatpush.msra.mxu2 %v2167_v29  ;;  %988 = vmatpush.msra.mxu3 %v2170_v48  ;;  %2562 = vst [vmem:[#allocation27_spill] sm:$0xff] %v2182_v27  ;;  %v78_v29 = vpop.permute.xlu2 %77  ;;  %v2564_v48 = vld [vmem:[#allocation25_spill] sm:$0xff] }
 0x328   :  { %929 = vmatpush.msra.mxu0 %v2173_v22  ;;  %949 = vmatpush.msra.mxu1 %v2176_v53  ;;  %v119_v23 = vmul.f32 %v2563_v26, %v78_v29  ;;  %v120_v50 = vmul.f32 %v2564_v48, %v78_v29  ;;  %v2566_v22 = vld [vmem:[#allocation31_spill] sm:$0xff]  ;;  %v121_v35 = vmul.f32 %v2493_v2, %v78_v29 }
 0x329   :  { %969 = vmatpush.msra.mxu2 %v2179_v25  ;;  %989 = vmatpush.msra.mxu3 %v2182_v27  ;;  %v122_v25 = vmul.f32 %v2494_v63, %v78_v29 }
 0x32a   :  { %v161_v3 = vadd.f32 %v2565_v61, %v119_v23  ;;  %v162_v58 = vadd.f32 %v2566_v22, %v120_v50  ;;  %v163_v27 = vadd.f32 %v2495_v59, %v121_v35 }
 0x32b   :  { %v164_v26 = vadd.f32 %v2466_v55, %v122_v25 }
 0x385   :  { %v727_v4 = vpop.f32.mrf.mxu0  ;;  %v747_v60 = vpop.f32.mrf.mxu1 }
 0x386   :  { %v728_v53 = vadd.f32 %v727_v4, %v161_v3  ;;  %v748_v47 = vadd.f32 %v747_v60, %v162_v58 }
 0x388   :  { %1201 = vtanh.f32 %v728_v53 }
 0x389   :  { %1203 = vtanh.f32 %v748_v47 }
 0x38c   :  { %v767_v33 = vpop.f32.mrf.mxu2  ;;  %v787_v48 = vpop.f32.mrf.mxu3 }
 0x38d   :  { %v768_v31 = vadd.f32 %v767_v33, %v163_v27  ;;  %v788_v61 = vadd.f32 %v787_v48, %v164_v26 }
 0x38e   :  { %v1202_v23 = vpop.eup %1201 }
 0x38f   :  { %v1204_v50 = vpop.eup %1203  ;;  %1205 = vtanh.f32 %v768_v31  ;;  %v794_v22 = vmul.f32 0.5, %v1202_v23 }
 0x390   :  { %v796_v4 = vmul.f32 0.5, %v1204_v50  ;;  %1207 = vtanh.f32 %v788_v61 }
 0x391   :  { %v795_v58 = vadd.f32 0.5, %v794_v22 }
 0x392   :  { %v797_v60 = vadd.f32 0.5, %v796_v4 }
 0x394   :  { %v800_v53 = vmul.f32 %v797_v60, %v2106_v24 }
 0x395   :  { %v1206_v3 = vpop.eup %1205 }
 0x396   :  { %v801_v47 = vmul.f32 %v1206_v3, %v795_v58  ;;  %v1208_v29 = vpop.eup %1207 }
 0x397   :  { %v798_v25 = vmul.f32 0.5, %v1208_v29 }
 0x398   :  { %v2194_v35 = vadd.f32 %v801_v47, %v800_v53 }
 0x399   :  { %v799_v33 = vadd.f32 0.5, %v798_v25 }
 0x39a   :  { %1209 = vtanh.f32 %v2194_v35 }
 0x3a0   :  { %v1210_v27 = vpop.eup %1209 }
 0x3a1   :  { %v804_v48 = vmul.f32 %v1210_v27, %v799_v33 }
 0x3a3   :  { %828 = vmatmul.f32.vlgmr.msrb.gmra.mxu0 %v804_v48  ;;  %848 = vmatmul.f32.vlgmr.msrb.gmra.mxu1 %v804_v48 }
 0x3a4   :  { %868 = vmatmul.f32.vlgmr.msrb.gmra.mxu2 %v804_v48  ;;  %888 = vmatmul.f32.vlgmr.msrb.gmra.mxu3 %v804_v48 }
 0x3a5   :  { %1019 = vmatpush.msrb.mxu0 %v1917_v5  ;;  %1039 = vmatpush.msrb.mxu1 %v1920_v6  ;;  %v2567_v5 = vld [vmem:[#allocation37_spill] sm:$0xff]  ;;  %v2568_v6 = vld [vmem:[#allocation38_spill] sm:$0xff] }
 0x3a6   :  { %1059 = vmatpush.msrb.mxu2 %v1923_v7  ;;  %1079 = vmatpush.msrb.mxu3 %v1926_v9  ;;  %v2569_v7 = vld [vmem:[#allocation26_spill] sm:$0xff] }
 0x3a7   :  { %1020 = vmatpush.msrb.mxu0 %v1929_v10  ;;  %1040 = vmatpush.msrb.mxu1 %v1932_v11  ;;  %v2570_v9 = vld [vmem:[#allocation34_spill] sm:$0xff]  ;;  %v2571_v10 = vld [vmem:[#allocation36_spill] sm:$0xff]  ;;  %v2572_v11 = vld [vmem:[#allocation7_spill] sm:$0xff] }
 0x3a8   :  { %1060 = vmatpush.msrb.mxu2 %v1935_v12  ;;  %1080 = vmatpush.msrb.mxu3 %v1938_v13  ;;  %v2573_v12 = vld [vmem:[#allocation8_spill] sm:$0xff]  ;;  %v2574_v13 = vld [vmem:[#allocation9_spill] sm:$0xff] }
 0x3a9   :  { %1021 = vmatpush.msrb.mxu0 %v1941_v14  ;;  %1041 = vmatpush.msrb.mxu1 %v1944_v15  ;;  %v2575_v14 = vld [vmem:[#allocation10_spill] sm:$0xff]  ;;  %v2576_v15 = vld [vmem:[#allocation11_spill] sm:$0xff] }
 0x3aa   :  { %1061 = vmatpush.msrb.mxu2 %v1947_v16  ;;  %1081 = vmatpush.msrb.mxu3 %v1950_v17  ;;  %v2577_v16 = vld [vmem:[#allocation12_spill] sm:$0xff]  ;;  %v2578_v17 = vld [vmem:[#allocation13_spill] sm:$0xff] }
 0x3ab   :  { %1022 = vmatpush.msrb.mxu0 %v1953_v18  ;;  %1042 = vmatpush.msrb.mxu1 %v1956_v19  ;;  %v2579_v18 = vld [vmem:[#allocation14_spill] sm:$0xff]  ;;  %v2580_v19 = vld [vmem:[#allocation15_spill] sm:$0xff] }
 0x3ac   :  { %1062 = vmatpush.msrb.mxu2 %v1959_v20  ;;  %1082 = vmatpush.msrb.mxu3 %v1962_v21  ;;  %v2581_v20 = vld [vmem:[#allocation16_spill] sm:$0xff]  ;;  %v2582_v21 = vld [vmem:[#allocation17_spill] sm:$0xff] }
 0x3ad   :  { %1023 = vmatpush.msrb.mxu0 %v1965_v28  ;;  %1043 = vmatpush.msrb.mxu1 %v1968_v30  ;;  %v2583_v28 = vld [vmem:[#allocation18_spill] sm:$0xff]  ;;  %v2584_v30 = vld [vmem:[#allocation19_spill] sm:$0xff] }
 0x3ae   :  { %1063 = vmatpush.msrb.mxu2 %v1971_v32  ;;  %1083 = vmatpush.msrb.mxu3 %v1974_v34  ;;  %v2585_v32 = vld [vmem:[#allocation20_spill] sm:$0xff]  ;;  %v2586_v34 = vld [vmem:[#allocation21_spill] sm:$0xff] }
 0x3af   :  { %1024 = vmatpush.msrb.mxu0 %v1977_v36  ;;  %1044 = vmatpush.msrb.mxu1 %v1980_v37  ;;  %v2587_v36 = vld [vmem:[#allocation22_spill] sm:$0xff]  ;;  %v2588_v37 = vld [vmem:[#allocation23_spill] sm:$0xff] }
 0x3b0   :  { %1064 = vmatpush.msrb.mxu2 %v1983_v38  ;;  %1084 = vmatpush.msrb.mxu3 %v1986_v39  ;;  %v2589_v38 = vld [vmem:[#allocation27_spill] sm:$0xff]  ;;  %v83_v39 = vpop.permute.xlu0 %82 }
 0x3b1   :  { %1025 = vmatpush.msrb.mxu0 %v1989_v40  ;;  %1045 = vmatpush.msrb.mxu1 %v1992_v41  ;;  %v2590_v40 = vld [vmem:[#allocation24_spill] sm:$0xff] }
 0x3b2   :  { %1065 = vmatpush.msrb.mxu2 %v1995_v42  ;;  %1085 = vmatpush.msrb.mxu3 %v1998_v43  ;;  %v123_v41 = vmul.f32 %v2590_v40, %v83_v39  ;;  %v2591_v42 = vld [vmem:[#allocation25_spill] sm:$0xff] }
 0x3b3   :  { %1026 = vmatpush.msrb.mxu0 %v2001_v44  ;;  %1046 = vmatpush.msrb.mxu1 %v2004_v45  ;;  %v124_v43 = vmul.f32 %v2591_v42, %v83_v39  ;;  %v2592_v44 = vld [vmem:[#allocation30_spill] sm:$0xff] }
 0x3b4   :  { %1066 = vmatpush.msrb.mxu2 %v2007_v46  ;;  %1086 = vmatpush.msrb.mxu3 %v2010_v8  ;;  %v165_v45 = vadd.f32 %v2592_v44, %v123_v41  ;;  %v2593_v46 = vld [vmem:[#allocation31_spill] sm:$0xff] }
 0x3b5   :  { %1027 = vmatpush.msrb.mxu0 %v2013_v1  ;;  %1047 = vmatpush.msrb.mxu1 %v2016_v54  ;;  %v166_v8 = vadd.f32 %v2593_v46, %v124_v43  ;;  %v1009_v43 = vld [vmem:[%s2289_s2] sm:$0xf] }
 0x3b6   :  { %1067 = vmatpush.msrb.mxu2 %v2019_v62  ;;  %1087 = vmatpush.msrb.mxu3 %v2022_v56 }
 0x3b7   :  { %1028 = vmatpush.msrb.mxu0 %v2025_v52  ;;  %1048 = vmatpush.msrb.mxu1 %v2028_v51  ;;  %v125_v52 = vmul.f32 %v2493_v2, %v83_v39  ;;  %v126_v51 = vmul.f32 %v2494_v63, %v83_v39 }
 0x3b8   :  { %1068 = vmatpush.msrb.mxu2 %v2031_v0  ;;  %1088 = vmatpush.msrb.mxu3 %v2034_v49 }
 0x3b9   :  { %1029 = vmatpush.msrb.mxu0 %v2037_v57  ;;  %1049 = vmatpush.msrb.mxu1 %v2567_v5  ;;  %v167_v0 = vadd.f32 %v2495_v59, %v125_v52  ;;  %v168_v57 = vadd.f32 %v2466_v55, %v126_v51  ;;  %v88_v5 = vpop.permute.xlu1 %87 }
 0x3ba   :  { %1069 = vmatpush.msrb.mxu2 %v2568_v6  ;;  %1089 = vmatpush.msrb.mxu3 %v2569_v7  ;;  %v127_v6 = vmul.f32 %v2590_v40, %v88_v5  ;;  %v128_v7 = vmul.f32 %v2591_v42, %v88_v5 }
 0x3bb   :  { %1030 = vmatpush.msrb.mxu0 %v2570_v9  ;;  %1050 = vmatpush.msrb.mxu1 %v2571_v10 }
 0x3bc   :  { %1070 = vmatpush.msrb.mxu2 %v2572_v11  ;;  %1090 = vmatpush.msrb.mxu3 %v2573_v12  ;;  %v169_v9 = vadd.f32 %v2592_v44, %v127_v6  ;;  %v1011_v44 = vperm.slane %v1009_v43, 0 }
 0x3bd   :  { %1031 = vmatpush.msrb.mxu0 %v2574_v13  ;;  %1051 = vmatpush.msrb.mxu1 %v2575_v14  ;;  %v129_v14 = vmul.f32 %v2493_v2, %v88_v5 }
 0x3be   :  { %1071 = vmatpush.msrb.mxu2 %v2576_v15  ;;  %1091 = vmatpush.msrb.mxu3 %v2577_v16  ;;  %v130_v15 = vmul.f32 %v2494_v63, %v88_v5 }
 0x3bf   :  { %1032 = vmatpush.msrb.mxu0 %v2578_v17  ;;  %1052 = vmatpush.msrb.mxu1 %v2579_v18  ;;  %v171_v16 = vadd.f32 %v2495_v59, %v129_v14 }
 0x3c0   :  { %1072 = vmatpush.msrb.mxu2 %v2580_v19  ;;  %1092 = vmatpush.msrb.mxu3 %v2581_v20  ;;  %v172_v18 = vadd.f32 %v2466_v55, %v130_v15 }
 0x3c1   :  { %1033 = vmatpush.msrb.mxu0 %v2582_v21  ;;  %1053 = vmatpush.msrb.mxu1 %v2583_v28 }
 0x3c2   :  { %1073 = vmatpush.msrb.mxu2 %v2584_v30  ;;  %1093 = vmatpush.msrb.mxu3 %v2585_v32 }
 0x3c3   :  { %1034 = vmatpush.msrb.mxu0 %v2586_v34  ;;  %1054 = vmatpush.msrb.mxu1 %v2587_v36 }
 0x3c4   :  { %1074 = vmatpush.msrb.mxu2 %v2588_v37  ;;  %1094 = vmatpush.msrb.mxu3 %v2589_v38 }
 0x420   :  { %v829_v1 = vpop.f32.mrf.mxu0  ;;  %v849_v54 = vpop.f32.mrf.mxu1 }
 0x421   :  { %v830_v62 = vadd.f32 %v829_v1, %v165_v45  ;;  %v850_v56 = vadd.f32 %v849_v54, %v166_v8  ;;  %v1012_v45 = vperm.slane %v1009_v43, 1 }
 0x423   :  { %1211 = vtanh.f32 %v830_v62  ;;  %v1013_v62 = vperm.slane %v1009_v43, 2 }
 0x424   :  { %1213 = vtanh.f32 %v850_v56  ;;  %v1014_v56 = vperm.slane %v1009_v43, 3 }
 0x427   :  { %v869_v49 = vpop.f32.mrf.mxu2  ;;  %v889_v24 = vpop.f32.mrf.mxu3 }
 0x428   :  { %v870_v31 = vadd.f32 %v869_v49, %v167_v0  ;;  %v890_v22 = vadd.f32 %v889_v24, %v168_v57 }
 0x429   :  { %v1212_v61 = vpop.eup %1211 }
 0x42a   :  { %v1214_v26 = vpop.eup %1213  ;;  %1215 = vtanh.f32 %v870_v31  ;;  %v896_v23 = vmul.f32 0.5, %v1212_v61 }
 0x42b   :  { %v898_v50 = vmul.f32 0.5, %v1214_v26  ;;  %1217 = vtanh.f32 %v890_v22 }
 0x42c   :  { %v897_v60 = vadd.f32 0.5, %v896_v23 }
 0x42d   :  { %v899_v4 = vadd.f32 0.5, %v898_v50 }
 0x42f   :  { %v902_v3 = vmul.f32 %v899_v4, %v2194_v35  ;;  %v170_v35 = vadd.f32 %v2593_v46, %v128_v7 }
 0x430   :  { %v1216_v58 = vpop.eup %1215 }
 0x431   :  { %v903_v53 = vmul.f32 %v1216_v58, %v897_v60  ;;  %v1218_v47 = vpop.eup %1217 }
 0x432   :  { %v900_v25 = vmul.f32 0.5, %v1218_v47  ;;  %v1149_v47 = vld [vmem:[%s2291_s4] ss:$0 sm:$0xff] }
 0x433   :  { %v904_v29 = vadd.f32 %v903_v53, %v902_v3 }
 0x434   :  { %v901_v33 = vadd.f32 0.5, %v900_v25 }
 0x435   :  { %1219 = vtanh.f32 %v904_v29 }
 0x43b   :  { %v1220_v27 = vpop.eup %1219 }
 0x43c   :  { %v906_v48 = vmul.f32 %v1220_v27, %v901_v33  ;;  %v1150_v27 = vld [vmem:[#allocation3] ss:$0 sm:$0xff] }
 0x43e   :  { %930 = vmatmul.f32.vlgmr.msra.gmra.mxu0 %v906_v48  ;;  %950 = vmatmul.f32.vlgmr.msra.gmra.mxu1 %v906_v48 }
 0x43f   :  { %970 = vmatmul.f32.vlgmr.msra.gmra.mxu2 %v906_v48  ;;  %990 = vmatmul.f32.vlgmr.msra.gmra.mxu3 %v906_v48 }
 0x4bb   :  { %v931_v10 = vpop.f32.mrf.mxu0  ;;  %v951_v11 = vpop.f32.mrf.mxu1 }
 0x4bc   :  { %v932_v12 = vadd.f32 %v931_v10, %v169_v9  ;;  %v952_v13 = vadd.f32 %v951_v11, %v170_v35 }
 0x4be   :  { %1221 = vtanh.f32 %v932_v12 }
 0x4bf   :  { %1223 = vtanh.f32 %v952_v13 }
 0x4c2   :  { %v971_v17 = vpop.f32.mrf.mxu2  ;;  %v991_v19 = vpop.f32.mrf.mxu3 }
 0x4c3   :  { %v972_v20 = vadd.f32 %v971_v17, %v171_v16  ;;  %v992_v28 = vadd.f32 %v991_v19, %v172_v18 }
 0x4c4   :  { %v1222_v21 = vpop.eup %1221 }
 0x4c5   :  { %v1224_v30 = vpop.eup %1223  ;;  %1225 = vtanh.f32 %v972_v20  ;;  %v998_v32 = vmul.f32 0.5, %v1222_v21 }
 0x4c6   :  { %v1000_v34 = vmul.f32 0.5, %v1224_v30  ;;  %1227 = vtanh.f32 %v992_v28 }
 0x4c7   :  { %v999_v2 = vadd.f32 0.5, %v998_v32 }
 0x4c8   :  { %v1001_v36 = vadd.f32 0.5, %v1000_v34 }
 0x4ca   :  { %v1004_v63 = vmul.f32 %v1001_v36, %v904_v29 }
 0x4cb   :  { %v1226_v37 = vpop.eup %1225 }
 0x4cc   :  { %v1005_v38 = vmul.f32 %v1226_v37, %v999_v2  ;;  %v1228_v39 = vpop.eup %1227 }
 0x4cd   :  { %v1002_v59 = vmul.f32 0.5, %v1228_v39 }
 0x4ce   :  { %v1006_v40 = vadd.f32 %v1005_v38, %v1004_v63 }
 0x4cf   :  { %v1003_v41 = vadd.f32 0.5, %v1002_v59 }
 0x4d0   :  { %1229 = vtanh.f32 %v1006_v40 }
 0x4d6   :  { %v1230_v55 = vpop.eup %1229 }
 0x4d7   :  { %v1008_v42 = vmul.f32 %v1230_v55, %v1003_v41 }
 0x4d9   :  { %1035 = vmatmul.f32.vlgmr.msrb.gmra.mxu0 %v1008_v42  ;;  %1055 = vmatmul.f32.vlgmr.msrb.gmra.mxu1 %v1008_v42 }
 0x4da   :  { %1075 = vmatmul.f32.vlgmr.msrb.gmra.mxu2 %v1008_v42  ;;  %1095 = vmatmul.f32.vlgmr.msrb.gmra.mxu3 %v1008_v42 }
 0x556   :  { %v1036_v46 = vpop.f32.mrf.mxu0  ;;  %v1056_v8 = vpop.f32.mrf.mxu1 }
 0x557   :  { %v1037_v1 = vadd.f32 %v1036_v46, %v1011_v44  ;;  %v1057_v54 = vadd.f32 %v1056_v8, %v1012_v45 }
 0x559   :  { %1231 = vtanh.f32 %v1037_v1 }
 0x55a   :  { %1233 = vtanh.f32 %v1057_v54 }
 0x55d   :  { %v1076_v52 = vpop.f32.mrf.mxu2  ;;  %v1096_v51 = vpop.f32.mrf.mxu3 }
 0x55e   :  { %v1077_v0 = vadd.f32 %v1076_v52, %v1013_v62  ;;  %v1097_v57 = vadd.f32 %v1096_v51, %v1014_v56 }
 0x55f   :  { %v1232_v49 = vpop.eup %1231 }
 0x560   :  { %v1234_v24 = vpop.eup %1233  ;;  %1235 = vtanh.f32 %v1077_v0  ;;  %v1103_v31 = vmul.f32 0.5, %v1232_v49 }
 0x561   :  { %v1105_v61 = vmul.f32 0.5, %v1234_v24  ;;  %1237 = vtanh.f32 %v1097_v57 }
 0x562   :  { %v1104_v26 = vadd.f32 0.5, %v1103_v31 }
 0x563   :  { %v1106_v22 = vadd.f32 0.5, %v1105_v61 }
 0x565   :  { %v1109_v50 = vmul.f32 %v1106_v22, %v1006_v40 }
 0x566   :  { %v1236_v23 = vpop.eup %1235 }
 0x567   :  { %v1110_v4 = vmul.f32 %v1236_v23, %v1104_v26  ;;  %v1238_v60 = vpop.eup %1237 }
 0x568   :  { %v1107_v3 = vmul.f32 0.5, %v1238_v60 }
 0x569   :  { %v1111_v58 = vadd.f32 %v1110_v4, %v1109_v50 }
 0x56a   :  { %v1108_v53 = vadd.f32 0.5, %v1107_v3 }
 0x56b   :  { %1239 = vtanh.f32 %v1111_v58 }
 0x571   :  { %v1240_v29 = vpop.eup %1239 }
 0x572   :  { %v1113_v25 = vmul.f32 %v1240_v29, %v1108_v53 }
 0x574   :  { %v1118_v33 = vmul.f32 %v1149_v47, %v1113_v25 }
 0x576   :  { %1119 = vadd.xlane.f32.xlu2 %v1118_v33 }
 0x5e9   :  { %v1120_v48 = vpop.xlane.xlu2 %1119 }
 0x5ea   :  { %v1125_v5 = vadd.f32 %v1150_v27, %v1120_v48 }
 0x5ec   :  { %1127 = vst.msk [vmem:[%s2293_s6] sm:$0xff] %vm1126_vm1, %v1125_v5 }
 0x5ed   :  { %1132 = vsyncpa [#allocation5], 1 }

</bundles_post_ra>
